<compile_context>
chip_gen: v6e
topology: v6e:2x2x1
jax: 0.10.0
libtpu: 0.0.40
codegen_flags: <defaults>
</compile_context>

<pallas_src>
import math
import functools

import jax
import jax.numpy as jnp
from jax import lax
from jax.experimental import pallas as pl
from jax.experimental.pallas import tpu as pltpu


# ----------------------------- Pallas kernel --------------------------------

def _self_attention_kernel(x_ref, g_ref, b_ref, wqkv_ref, wout_ref,
                           cos_ref, sin_ref, o_ref,
                           *, n_heads, head_dim, eps, scale,
                           exp_in_bf16, approx_recip):
    S, D = x_ref.shape
    H = n_heads
    rot = head_dim // 2          # rotary dims per head (flash_attn: 2 * cos.shape[-1])
    half = head_dim // 4         # size of each rotary half

    x = x_ref[...].astype(jnp.float32)                      # (S, D)

    # --- LayerNorm (eps=1e-5, biased variance, f32 math) ---------------------
    mean = jnp.mean(x, axis=-1, keepdims=True)
    xc = x - mean
    var = jnp.mean(xc * xc, axis=-1, keepdims=True)
    xn = xc * lax.rsqrt(var + eps)
    xn = xn * g_ref[...] + b_ref[...]                        # (S, D)

    # --- QKV projection: bf16 operands, f32 accumulation (MXU) ---------------
    qkv = jnp.dot(xn.astype(jnp.bfloat16), wqkv_ref[...],
                  preferred_element_type=jnp.float32)        # (S, 3D) f32

    # --- slab slices at D boundaries + one retile per tensor -----------------
    def heads(t):                                            # (S, D) -> (H, S, hd)
        return jnp.transpose(t.reshape(S, H, head_dim), (1, 0, 2))

    q3 = heads(qkv[:, :D])
    k3 = heads(qkv[:, D:2 * D])
    v3 = heads(qkv[:, 2 * D:])

    # --- rotary embedding, batched over heads (GPT-NeoX / non-interleaved) ---
    cos = cos_ref[...]                                       # (S, half)
    sin = sin_ref[...]

    def rope(t):                                             # t: (H, S, hd)
        x1 = t[..., :half]
        x2 = t[..., half:rot]
        rest = t[..., rot:]
        return jnp.concatenate([x1 * cos - x2 * sin,
                                x2 * cos + x1 * sin,
                                rest], axis=-1)

    q3 = rope(q3) * scale
    k3 = rope(k3)

    # --- scores: head-batched matmul + in-kernel causal mask -----------------
    s = jnp.einsum('hqd,hkd->hqk',
                   q3.astype(jnp.bfloat16), k3.astype(jnp.bfloat16),
                   preferred_element_type=jnp.float32)       # (H, S, S) f32
    row = lax.broadcasted_iota(jnp.int32, (S, S), 0)
    col = lax.broadcasted_iota(jnp.int32, (S, S), 1)
    # NOTE: strictly-causal (diagonal always unmasked) so no fully-masked rows.
    s = jnp.where(col <= row, s, jnp.float32(-1e30))

    # --- softmax: max / row-sum in f32, exp optionally bf16 (v6e/v7x) --------
    m = jnp.max(s, axis=-1, keepdims=True)
    if exp_in_bf16:
        p_bf = jnp.exp((s - m).astype(jnp.bfloat16))
        l = jnp.sum(p_bf.astype(jnp.float32), axis=-1, keepdims=True)
    else:
        p = jnp.exp(s - m)
        l = jnp.sum(p, axis=-1, keepdims=True)               # (H, S, 1)
        p_bf = p.astype(jnp.bfloat16)

    ctx = jnp.einsum('hqk,hkd->hqd', p_bf, v3.astype(jnp.bfloat16),
                     preferred_element_type=jnp.float32)     # (H, S, hd)
    if approx_recip:
        ctx = ctx * pl.reciprocal(l, approx=True)            # EUP slot
    else:
        ctx = ctx / l                                        # exact (training-grade)

    # --- out-projection fused with cross-head sum: one full-D contraction ----
    ctx_sd = jnp.transpose(ctx, (1, 0, 2)).reshape(S, D)     # (S, D), single retile
    out = jnp.dot(ctx_sd.astype(jnp.bfloat16), wout_ref[...],
                  preferred_element_type=jnp.float32)        # (S, D)
    o_ref[...] = out.astype(o_ref.dtype)


# ------------------------------- wrapper -------------------------------------

def self_attention(x, ln_g, ln_b, w_qkv_t, w_out_t, cos, sin, *, head_dim,
                   exp_in_bf16=False, approx_recip=True):
    B, S, D = x.shape
    assert D % head_dim == 0 and head_dim % 4 == 0, "head_dim must divide D and be /4"
    n_heads = D // head_dim
    half = head_dim // 4

    # bf16 weights for the MXU; accumulation stays f32 inside the kernel.
    w_qkv_bf = w_qkv_t.astype(jnp.bfloat16)                  # (D, 3D)
    w_out_bf = w_out_t.astype(jnp.bfloat16)                  # (D, D)

    kernel = functools.partial(
        _self_attention_kernel,
        n_heads=n_heads, head_dim=head_dim, eps=1e-5,
        scale=1.0 / math.sqrt(head_dim),
        exp_in_bf16=exp_in_bf16, approx_recip=approx_recip)

    # Scoped-VMEM budget from the actual working set (x/out blocks, weights,
    # qkv, per-head q/k/v/ctx, score+prob blocks) with a 4x cushion for
    # double-buffering and compiler temporaries; clamped to <= 64 MiB so the
    # same budget is valid on v7x's 64 MiB physical VMEM.
    f32, bf16 = 4, 2
    est = (2 * S * D * f32
           + D * 3 * D * bf16 + D * D * bf16
           + S * 3 * D * f32
           + 4 * n_heads * S * head_dim * f32
           + 2 * n_heads * S * S * f32)
    vmem_limit = int(min(max(4 * est, 32 * 2 ** 20), 64 * 2 ** 20))

    out_shape = jax.ShapeDtypeStruct((B, S, D), x.dtype)

    def build(single_buffer_consts):
        # Grid-invariant operands: single-buffer them (index_map is constant
        # across the grid, so double-buffering only wastes VMEM).
        mode = ({"pipeline_mode": pl.Buffered(1)} if single_buffer_consts else {})
        in_specs = [
            pl.BlockSpec((pl.Squeezed(), S, D), lambda b: (b, 0, 0)),        # x
            pl.BlockSpec((1, D), lambda b: (0, 0), **mode),                  # ln gamma
            pl.BlockSpec((1, D), lambda b: (0, 0), **mode),                  # ln beta
            pl.BlockSpec((D, 3 * D), lambda b: (0, 0), **mode),              # W_qkv^T (bf16)
            pl.BlockSpec((D, D), lambda b: (0, 0), **mode),                  # W_out^T (bf16)
            pl.BlockSpec((S, half), lambda b: (0, 0), **mode),               # cos
            pl.BlockSpec((S, half), lambda b: (0, 0), **mode),               # sin
        ]
        return pl.pallas_call(
            kernel,
            out_shape=out_shape,
            grid_spec=pltpu.PrefetchScalarGridSpec(
                num_scalar_prefetch=0,
                grid=(B,),
                in_specs=in_specs,
                out_specs=pl.BlockSpec((pl.Squeezed(), S, D), lambda b: (b, 0, 0)),
            ),
            compiler_params=pltpu.CompilerParams(
                dimension_semantics=("parallel",),
                vmem_limit_bytes=vmem_limit),
        )

    args = (x, ln_g, ln_b, w_qkv_bf, w_out_bf, cos, sin)
    try:
        return build(True)(*args)
    except Exception:
        # Fallback for jax builds / targets where pipeline_mode=pl.Buffered(1)
        # on constant operands is not supported; identical semantics.
        return build(False)(*args)


# -------------------- rotary tables (mirrors module __init__) ----------------

def make_axial_pos(h, w):
    h_pos = jnp.linspace(-1.0, 1.0, h + 1)
    w_pos = jnp.linspace(-1.0, 1.0, w + 1)
    h_pos = (h_pos[:-1] + h_pos[1:]) / 2
    w_pos = (w_pos[:-1] + w_pos[1:]) / 2
    hh, ww = jnp.meshgrid(h_pos, w_pos, indexing="ij")
    return jnp.stack([hh, ww], axis=-1).reshape(h * w, 2)


def make_rope_tables(head_dim, seq_len):
    log_min = math.log(math.pi)
    log_max = math.log(10 * math.pi)
    freqs = jnp.exp(jnp.linspace(log_min, log_max, head_dim // 8 + 1)[:-1])
    pos = make_axial_pos(16, 16)                                  # (256, 2)
    pos = jnp.concatenate([jnp.zeros((1, 2)), pos], axis=0)       # (257, 2)
    theta_h = pos[:, 0:1] * freqs
    theta_w = pos[:, 1:2] * freqs
    theta = jnp.concatenate([theta_h, theta_w], axis=-1)          # (257, head_dim//4)
    return (jnp.cos(theta)[:seq_len].astype(jnp.float32),
            jnp.sin(theta)[:seq_len].astype(jnp.float32))


# ------------------------- pure-JAX reference --------------------------------
# Mirrors the kernel's bf16 matmul operands (f32 accumulation) so the comparison
# validates structure rather than f32-vs-bf16 precision.

def reference(x, ln_g, ln_b, w_qkv_t, w_out_t, cos, sin, *, head_dim):
    B, S, D = x.shape
    H = D // head_dim
    rot, half = head_dim // 2, head_dim // 4
    mean = jnp.mean(x, axis=-1, keepdims=True)
    xc = x - mean
    var = jnp.mean(xc * xc, axis=-1, keepdims=True)
    xn = xc * lax.rsqrt(var + 1e-5) * ln_g[0] + ln_b[0]
    qkv = jnp.einsum('bsc,cd->bsd', xn.astype(jnp.bfloat16),
                     w_qkv_t.astype(jnp.bfloat16),
                     preferred_element_type=jnp.float32)          # (B, S, 3D)
    qkv = qkv.reshape(B, S, 3, H, head_dim)
    q, k, v = qkv[:, :, 0], qkv[:, :, 1], qkv[:, :, 2]            # (B, S, H, hd)

    def rope(t):
        x1, x2, rest = t[..., :half], t[..., half:rot], t[..., rot:]
        c = cos[None, :, None, :]
        s = sin[None, :, None, :]
        return jnp.concatenate([x1 * c - x2 * s, x2 * c + x1 * s, rest], axis=-1)

    q = rope(q) * (1.0 / math.sqrt(head_dim))
    k = rope(k)
    s = jnp.einsum('bqhd,bkhd->bhqk', q.astype(jnp.bfloat16), k.astype(jnp.bfloat16),
                   preferred_element_type=jnp.float32)
    mask = jnp.where(jnp.tril(jnp.ones((S, S), dtype=bool)), 0.0, -1e30)
    s = s + mask[None, None]
    p = jax.nn.softmax(s, axis=-1)
    o = jnp.einsum('bhqk,bkhd->bqhd', p.astype(jnp.bfloat16), v.astype(jnp.bfloat16),
                   preferred_element_type=jnp.float32).reshape(B, S, D)
    return jnp.einsum('bsd,de->bse', o.astype(jnp.bfloat16),
                      w_out_t.astype(jnp.bfloat16),
                      preferred_element_type=jnp.float32)


# --------------------------------- main ---------------------------------------

if __name__ == "__main__":
    # NOTE: tiny shapes for the self-check only. Production / benchmarking
    # should use hardware-aligned shapes (S a multiple of 128, head_dim >= 64,
    # D >= 128) so MXU passes are filled and stores are lane-dense.
    B, S, head_dim, dim = 2, 8, 16, 32                      # n_heads = 2

    key = jax.random.PRNGKey(0)
    kx, kq, ko = jax.random.split(key, 3)
    x = jax.random.normal(kx, (B, S, dim), dtype=jnp.float32)

    # Deterministic synthetic parameters (shapes match the module's __init__).
    # NOTE: the original module zero-inits out_proj; a small random init is used
    # here so the full kernel path is exercised (output would otherwise be 0).
    ln_g = jnp.ones((1, dim), dtype=jnp.float32)
    ln_b = jnp.zeros((1, dim), dtype=jnp.float32)
    w_qkv_t = 0.05 * jax.random.normal(kq, (dim, 3 * dim), dtype=jnp.float32)
    w_out_t = 0.05 * jax.random.normal(ko, (dim, dim), dtype=jnp.float32)
    cos, sin = make_rope_tables(head_dim, S)

    out = self_attention(x, ln_g, ln_b, w_qkv_t, w_out_t, cos, sin,
                         head_dim=head_dim)
    out = jax.block_until_ready(out)

    ref = reference(x, ln_g, ln_b, w_qkv_t, w_out_t, cos, sin, head_dim=head_dim)
    assert out.shape == (B, S, dim)
    assert jnp.all(jnp.isfinite(out))
    # Tolerance covers the approx-reciprocal softmax normalization and minor
    # bf16-accumulation-order differences vs. the XLA reference.
    assert jnp.allclose(out, ref, rtol=2e-3, atol=2e-3), \
        float(jnp.max(jnp.abs(out - ref)))
    print("KERNEL_OK")
</pallas_src>

<mosaic_0001>
module attributes {stable_mosaic.version = 11 : i64} {
  func.func @_self_attention_kernel(%arg0: i32, %arg1: memref<1x8x32xf32, #tpu.memory_space<vmem>>, %arg2: memref<1x32xf32, #tpu.memory_space<vmem>>, %arg3: memref<1x32xf32, #tpu.memory_space<vmem>>, %arg4: memref<32x96xbf16, #tpu.memory_space<vmem>>, %arg5: memref<32x32xbf16, #tpu.memory_space<vmem>>, %arg6: memref<8x4xf32, #tpu.memory_space<vmem>>, %arg7: memref<8x4xf32, #tpu.memory_space<vmem>>, %arg8: memref<1x8x32xf32, #tpu.memory_space<vmem>>) attributes {dimension_semantics = [#tpu.dimension_semantics<parallel>], iteration_bounds = array<i64: 2>, scalar_prefetch = 0 : i64, scratch_operands = 0 : i64, tpu.core_type = #tpu.core_type<tc>, window_params = [{transform_indices = @transform_0, window_bounds = array<i64: 1, 8, 32>}, {pipeline_mode = #tpu.pipeline_mode<synchronous>, transform_indices = @transform_1, window_bounds = array<i64: 1, 32>}, {pipeline_mode = #tpu.pipeline_mode<synchronous>, transform_indices = @transform_2, window_bounds = array<i64: 1, 32>}, {pipeline_mode = #tpu.pipeline_mode<synchronous>, transform_indices = @transform_3, window_bounds = array<i64: 32, 96>}, {pipeline_mode = #tpu.pipeline_mode<synchronous>, transform_indices = @transform_4, window_bounds = array<i64: 32, 32>}, {pipeline_mode = #tpu.pipeline_mode<synchronous>, transform_indices = @transform_5, window_bounds = array<i64: 8, 4>}, {pipeline_mode = #tpu.pipeline_mode<synchronous>, transform_indices = @transform_6, window_bounds = array<i64: 8, 4>}, {transform_indices = @transform_7, window_bounds = array<i64: 1, 8, 32>}]} {
    %c0 = arith.constant 0 : index
    %c0_0 = arith.constant 0 : index
    %c0_1 = arith.constant 0 : index
    %0 = vector.load %arg1[%c0, %c0_0, %c0_1] : memref<1x8x32xf32, #tpu.memory_space<vmem>>, vector<1x8x32xf32>
    %1 = vector.shape_cast %0 : vector<1x8x32xf32> to vector<8x32xf32>
    %cst = arith.constant dense<0.000000e+00> : vector<8xf32>
    %2 = vector.multi_reduction <add>, %1, %cst [1] : vector<8x32xf32> to vector<8xf32>
    %3 = vector.shape_cast %2 : vector<8xf32> to vector<8x1xf32>
    %cst_2 = arith.constant 3.200000e+01 : f32
    %4 = vector.broadcast %cst_2 : f32 to vector<8x1xf32>
    %5 = arith.divf %3, %4 : vector<8x1xf32>
    %6 = vector.broadcast %5 : vector<8x1xf32> to vector<8x32xf32>
    %7 = arith.subf %1, %6 : vector<8x32xf32>
    %8 = arith.mulf %7, %7 : vector<8x32xf32>
    %cst_3 = arith.constant dense<0.000000e+00> : vector<8xf32>
    %9 = vector.multi_reduction <add>, %8, %cst_3 [1] : vector<8x32xf32> to vector<8xf32>
    %10 = vector.shape_cast %9 : vector<8xf32> to vector<8x1xf32>
    %cst_4 = arith.constant 3.200000e+01 : f32
    %11 = vector.broadcast %cst_4 : f32 to vector<8x1xf32>
    %12 = arith.divf %10, %11 : vector<8x1xf32>
    %cst_5 = arith.constant 9.99999974E-6 : f32
    %13 = vector.broadcast %cst_5 : f32 to vector<8x1xf32>
    %14 = arith.addf %12, %13 : vector<8x1xf32>
    %15 = math.rsqrt %14 : vector<8x1xf32>
    %16 = vector.broadcast %15 : vector<8x1xf32> to vector<8x32xf32>
    %17 = arith.mulf %7, %16 : vector<8x32xf32>
    %c0_6 = arith.constant 0 : index
    %c0_7 = arith.constant 0 : index
    %18 = vector.load %arg2[%c0_6, %c0_7] : memref<1x32xf32, #tpu.memory_space<vmem>>, vector<1x32xf32>
    %19 = vector.broadcast %18 : vector<1x32xf32> to vector<8x32xf32>
    %20 = arith.mulf %17, %19 : vector<8x32xf32>
    %c0_8 = arith.constant 0 : index
    %c0_9 = arith.constant 0 : index
    %21 = vector.load %arg3[%c0_8, %c0_9] : memref<1x32xf32, #tpu.memory_space<vmem>>, vector<1x32xf32>
    %22 = vector.broadcast %21 : vector<1x32xf32> to vector<8x32xf32>
    %23 = arith.addf %20, %22 : vector<8x32xf32>
    %24 = arith.truncf %23 : vector<8x32xf32> to vector<8x32xbf16>
    %c0_10 = arith.constant 0 : index
    %c0_11 = arith.constant 0 : index
    %25 = vector.load %arg4[%c0_10, %c0_11] : memref<32x96xbf16, #tpu.memory_space<vmem>>, vector<32x96xbf16>
    %cst_12 = arith.constant dense<0.000000e+00> : vector<8x96xf32>
    %26 = tpu.matmul %24, %25, %cst_12 {dimension_numbers = #tpu.dot_dimension_numbers<[1], [0], [0], [1], [0, 0, 1, 1], [], []>} : vector<8x32xbf16>, vector<32x96xbf16>, vector<8x96xf32> -> vector<8x96xf32>
    %27 = vector.extract_strided_slice %26 {offsets = [0, 0], sizes = [8, 32], strides = [1, 1]} : vector<8x96xf32> to vector<8x32xf32>
    %28 = vector.shape_cast %27 : vector<8x32xf32> to vector<8x2x16xf32>
    %29 = tpu.transpose %28, [1, 0, 2] : vector<8x2x16xf32> -> vector<2x8x16xf32>
    %30 = vector.extract_strided_slice %26 {offsets = [0, 32], sizes = [8, 32], strides = [1, 1]} : vector<8x96xf32> to vector<8x32xf32>
    %31 = vector.shape_cast %30 : vector<8x32xf32> to vector<8x2x16xf32>
    %32 = tpu.transpose %31, [1, 0, 2] : vector<8x2x16xf32> -> vector<2x8x16xf32>
    %33 = vector.extract_strided_slice %26 {offsets = [0, 64], sizes = [8, 32], strides = [1, 1]} : vector<8x96xf32> to vector<8x32xf32>
    %34 = vector.shape_cast %33 : vector<8x32xf32> to vector<8x2x16xf32>
    %35 = tpu.transpose %34, [1, 0, 2] : vector<8x2x16xf32> -> vector<2x8x16xf32>
    %c0_13 = arith.constant 0 : index
    %c0_14 = arith.constant 0 : index
    %36 = vector.load %arg6[%c0_13, %c0_14] : memref<8x4xf32, #tpu.memory_space<vmem>>, vector<8x4xf32>
    %c0_15 = arith.constant 0 : index
    %c0_16 = arith.constant 0 : index
    %37 = vector.load %arg7[%c0_15, %c0_16] : memref<8x4xf32, #tpu.memory_space<vmem>>, vector<8x4xf32>
    %38 = vector.extract_strided_slice %29 {offsets = [0, 0, 0], sizes = [2, 8, 4], strides = [1, 1, 1]} : vector<2x8x16xf32> to vector<2x8x4xf32>
    %39 = vector.extract_strided_slice %29 {offsets = [0, 0, 4], sizes = [2, 8, 4], strides = [1, 1, 1]} : vector<2x8x16xf32> to vector<2x8x4xf32>
    %40 = vector.extract_strided_slice %29 {offsets = [0, 0, 8], sizes = [2, 8, 8], strides = [1, 1, 1]} : vector<2x8x16xf32> to vector<2x8x8xf32>
    %41 = vector.shape_cast %36 : vector<8x4xf32> to vector<1x8x4xf32>
    %42 = vector.broadcast %41 : vector<1x8x4xf32> to vector<2x8x4xf32>
    %43 = arith.mulf %38, %42 : vector<2x8x4xf32>
    %44 = vector.shape_cast %37 : vector<8x4xf32> to vector<1x8x4xf32>
    %45 = vector.broadcast %44 : vector<1x8x4xf32> to vector<2x8x4xf32>
    %46 = arith.mulf %39, %45 : vector<2x8x4xf32>
    %47 = arith.subf %43, %46 : vector<2x8x4xf32>
    %48 = vector.shape_cast %36 : vector<8x4xf32> to vector<1x8x4xf32>
    %49 = vector.broadcast %48 : vector<1x8x4xf32> to vector<2x8x4xf32>
    %50 = arith.mulf %39, %49 : vector<2x8x4xf32>
    %51 = vector.shape_cast %37 : vector<8x4xf32> to vector<1x8x4xf32>
    %52 = vector.broadcast %51 : vector<1x8x4xf32> to vector<2x8x4xf32>
    %53 = arith.mulf %38, %52 : vector<2x8x4xf32>
    %54 = arith.addf %50, %53 : vector<2x8x4xf32>
    %55 = tpu.concatenate %47, %54, %40 in 2 : vector<2x8x4xf32>, vector<2x8x4xf32>, vector<2x8x8xf32> -> vector<2x8x16xf32>
    %cst_17 = arith.constant 2.500000e-01 : f32
    %56 = vector.broadcast %cst_17 : f32 to vector<2x8x16xf32>
    %57 = arith.mulf %55, %56 : vector<2x8x16xf32>
    %58 = vector.extract_strided_slice %32 {offsets = [0, 0, 0], sizes = [2, 8, 4], strides = [1, 1, 1]} : vector<2x8x16xf32> to vector<2x8x4xf32>
    %59 = vector.extract_strided_slice %32 {offsets = [0, 0, 4], sizes = [2, 8, 4], strides = [1, 1, 1]} : vector<2x8x16xf32> to vector<2x8x4xf32>
    %60 = vector.extract_strided_slice %32 {offsets = [0, 0, 8], sizes = [2, 8, 8], strides = [1, 1, 1]} : vector<2x8x16xf32> to vector<2x8x8xf32>
    %61 = vector.shape_cast %36 : vector<8x4xf32> to vector<1x8x4xf32>
    %62 = vector.broadcast %61 : vector<1x8x4xf32> to vector<2x8x4xf32>
    %63 = arith.mulf %58, %62 : vector<2x8x4xf32>
    %64 = vector.shape_cast %37 : vector<8x4xf32> to vector<1x8x4xf32>
    %65 = vector.broadcast %64 : vector<1x8x4xf32> to vector<2x8x4xf32>
    %66 = arith.mulf %59, %65 : vector<2x8x4xf32>
    %67 = arith.subf %63, %66 : vector<2x8x4xf32>
    %68 = vector.shape_cast %36 : vector<8x4xf32> to vector<1x8x4xf32>
    %69 = vector.broadcast %68 : vector<1x8x4xf32> to vector<2x8x4xf32>
    %70 = arith.mulf %59, %69 : vector<2x8x4xf32>
    %71 = vector.shape_cast %37 : vector<8x4xf32> to vector<1x8x4xf32>
    %72 = vector.broadcast %71 : vector<1x8x4xf32> to vector<2x8x4xf32>
    %73 = arith.mulf %58, %72 : vector<2x8x4xf32>
    %74 = arith.addf %70, %73 : vector<2x8x4xf32>
    %75 = tpu.concatenate %67, %74, %60 in 2 : vector<2x8x4xf32>, vector<2x8x4xf32>, vector<2x8x8xf32> -> vector<2x8x16xf32>
    %76 = arith.truncf %57 : vector<2x8x16xf32> to vector<2x8x16xbf16>
    %77 = arith.truncf %75 : vector<2x8x16xf32> to vector<2x8x16xbf16>
    "tpu.trace_start"() <{level = 10 : i32, message = "hqd,hkd->hqk"}> : () -> ()
    %cst_18 = arith.constant dense<0.000000e+00> : vector<2x8x8xf32>
    %78 = tpu.matmul %76, %77, %cst_18 {dimension_numbers = #tpu.dot_dimension_numbers<[2], [2], [1], [1], [0, 0, 0, 1, 1, 1], [0], [0]>} : vector<2x8x16xbf16>, vector<2x8x16xbf16>, vector<2x8x8xf32> -> vector<2x8x8xf32>
    "tpu.trace_stop"() : () -> ()
    %79 = tpu.iota {dimensions = array<i32: 0>} : vector<8x8xi32>
    %80 = tpu.iota {dimensions = array<i32: 1>} : vector<8x8xi32>
    %81 = arith.cmpi sle, %80, %79 : vector<8x8xi32>
    %cst_19 = arith.constant -1.000000e+30 : f32
    %82 = vector.shape_cast %81 : vector<8x8xi1> to vector<1x8x8xi1>
    %83 = vector.broadcast %82 : vector<1x8x8xi1> to vector<2x8x8xi1>
    %84 = vector.broadcast %cst_19 : f32 to vector<2x8x8xf32>
    %85 = arith.select %83, %78, %84 : vector<2x8x8xi1>, vector<2x8x8xf32>
    %cst_20 = arith.constant dense<0xFF800000> : vector<2x8xf32>
    %86 = vector.multi_reduction <maximumf>, %85, %cst_20 [2] : vector<2x8x8xf32> to vector<2x8xf32>
    %87 = vector.shape_cast %86 : vector<2x8xf32> to vector<2x8x1xf32>
    %88 = vector.broadcast %87 : vector<2x8x1xf32> to vector<2x8x8xf32>
    %89 = arith.subf %85, %88 : vector<2x8x8xf32>
    %90 = math.exp %89 : vector<2x8x8xf32>
    %cst_21 = arith.constant dense<0.000000e+00> : vector<2x8xf32>
    %91 = vector.multi_reduction <add>, %90, %cst_21 [2] : vector<2x8x8xf32> to vector<2x8xf32>
    %92 = vector.shape_cast %91 : vector<2x8xf32> to vector<2x8x1xf32>
    %93 = arith.truncf %90 : vector<2x8x8xf32> to vector<2x8x8xbf16>
    %94 = arith.truncf %35 : vector<2x8x16xf32> to vector<2x8x16xbf16>
    "tpu.trace_start"() <{level = 10 : i32, message = "hqk,hkd->hqd"}> : () -> ()
    %cst_22 = arith.constant dense<0.000000e+00> : vector<2x8x16xf32>
    %95 = tpu.matmul %93, %94, %cst_22 {dimension_numbers = #tpu.dot_dimension_numbers<[2], [1], [1], [2], [0, 0, 0, 1, 1, 2], [0], [0]>} : vector<2x8x8xbf16>, vector<2x8x16xbf16>, vector<2x8x16xf32> -> vector<2x8x16xf32>
    "tpu.trace_stop"() : () -> ()
    %96 = tpu.reciprocal %92 {approx = true} : vector<2x8x1xf32> -> vector<2x8x1xf32>
    %97 = vector.broadcast %96 : vector<2x8x1xf32> to vector<2x8x16xf32>
    %98 = arith.mulf %95, %97 : vector<2x8x16xf32>
    %99 = tpu.transpose %98, [1, 0, 2] : vector<2x8x16xf32> -> vector<8x2x16xf32>
    %100 = vector.shape_cast %99 : vector<8x2x16xf32> to vector<8x32xf32>
    %101 = arith.truncf %100 : vector<8x32xf32> to vector<8x32xbf16>
    %c0_23 = arith.constant 0 : index
    %c0_24 = arith.constant 0 : index
    %102 = vector.load %arg5[%c0_23, %c0_24] : memref<32x32xbf16, #tpu.memory_space<vmem>>, vector<32x32xbf16>
    %cst_25 = arith.constant dense<0.000000e+00> : vector<8x32xf32>
    %103 = tpu.matmul %101, %102, %cst_25 {dimension_numbers = #tpu.dot_dimension_numbers<[1], [0], [0], [1], [0, 0, 1, 1], [], []>} : vector<8x32xbf16>, vector<32x32xbf16>, vector<8x32xf32> -> vector<8x32xf32>
    %c0_26 = arith.constant 0 : index
    %c0_27 = arith.constant 0 : index
    %c0_28 = arith.constant 0 : index
    %104 = vector.load %arg8[%c0_26, %c0_27, %c0_28] : memref<1x8x32xf32, #tpu.memory_space<vmem>>, vector<1x8x32xf32>
    %105 = vector.shape_cast %104 : vector<1x8x32xf32> to vector<8x32xf32>
    %106 = vector.shape_cast %103 : vector<8x32xf32> to vector<1x8x32xf32>
    tpu.vector_store %arg8[%c0_26, %c0_27, %c0_28], %106 {strides = array<i32>} : memref<1x8x32xf32, #tpu.memory_space<vmem>>, vector<1x8x32xf32>,
    return
  }
  func.func @transform_0(%arg0: i32) -> (i32, i32, i32) {
    %c0_i32 = arith.constant 0 : i32
    %c0_i32_0 = arith.constant 0 : i32
    %c0_i32_1 = arith.constant 0 : i32
    return %arg0, %c0_i32, %c0_i32_0 : i32, i32, i32
  }
  func.func @transform_1(%arg0: i32) -> (i32, i32) {
    %c0_i32 = arith.constant 0 : i32
    %c0_i32_0 = arith.constant 0 : i32
    %c0_i32_1 = arith.constant 0 : i32
    return %c0_i32, %c0_i32_0 : i32, i32
  }
  func.func @transform_2(%arg0: i32) -> (i32, i32) {
    %c0_i32 = arith.constant 0 : i32
    %c0_i32_0 = arith.constant 0 : i32
    %c0_i32_1 = arith.constant 0 : i32
    return %c0_i32, %c0_i32_0 : i32, i32
  }
  func.func @transform_3(%arg0: i32) -> (i32, i32) {
    %c0_i32 = arith.constant 0 : i32
    %c0_i32_0 = arith.constant 0 : i32
    %c0_i32_1 = arith.constant 0 : i32
    return %c0_i32, %c0_i32_0 : i32, i32
  }
  func.func @transform_4(%arg0: i32) -> (i32, i32) {
    %c0_i32 = arith.constant 0 : i32
    %c0_i32_0 = arith.constant 0 : i32
    %c0_i32_1 = arith.constant 0 : i32
    return %c0_i32, %c0_i32_0 : i32, i32
  }
  func.func @transform_5(%arg0: i32) -> (i32, i32) {
    %c0_i32 = arith.constant 0 : i32
    %c0_i32_0 = arith.constant 0 : i32
    %c0_i32_1 = arith.constant 0 : i32
    return %c0_i32, %c0_i32_0 : i32, i32
  }
  func.func @transform_6(%arg0: i32) -> (i32, i32) {
    %c0_i32 = arith.constant 0 : i32
    %c0_i32_0 = arith.constant 0 : i32
    %c0_i32_1 = arith.constant 0 : i32
    return %c0_i32, %c0_i32_0 : i32, i32
  }
  func.func @transform_7(%arg0: i32) -> (i32, i32, i32) {
    %c0_i32 = arith.constant 0 : i32
    %c0_i32_0 = arith.constant 0 : i32
    %c0_i32_1 = arith.constant 0 : i32
    return %arg0, %c0_i32, %c0_i32_0 : i32, i32, i32
  }
}

module attributes {stable_mosaic.version = 11 : i64} {
  func.func @_self_attention_kernel(%arg0: i32, %arg1: memref<1x8x32xf32, #tpu.memory_space<vmem>>, %arg2: memref<1x32xf32, #tpu.memory_space<vmem>>, %arg3: memref<1x32xf32, #tpu.memory_space<vmem>>, %arg4: memref<32x96xbf16, #tpu.memory_space<vmem>>, %arg5: memref<32x32xbf16, #tpu.memory_space<vmem>>, %arg6: memref<8x4xf32, #tpu.memory_space<vmem>>, %arg7: memref<8x4xf32, #tpu.memory_space<vmem>>, %arg8: memref<1x8x32xf32, #tpu.memory_space<vmem>>) attributes {dimension_semantics = [#tpu.dimension_semantics<parallel>], iteration_bounds = array<i64: 2>, scalar_prefetch = 0 : i64, scratch_operands = 0 : i64, tpu.core_type = #tpu.core_type<tc>, window_params = [{transform_indices = @transform_0, window_bounds = array<i64: 1, 8, 32>}, {pipeline_mode = #tpu.pipeline_mode<synchronous>, transform_indices = @transform_1, window_bounds = array<i64: 1, 32>}, {pipeline_mode = #tpu.pipeline_mode<synchronous>, transform_indices = @transform_2, window_bounds = array<i64: 1, 32>}, {pipeline_mode = #tpu.pipeline_mode<synchronous>, transform_indices = @transform_3, window_bounds = array<i64: 32, 96>}, {pipeline_mode = #tpu.pipeline_mode<synchronous>, transform_indices = @transform_4, window_bounds = array<i64: 32, 32>}, {pipeline_mode = #tpu.pipeline_mode<synchronous>, transform_indices = @transform_5, window_bounds = array<i64: 8, 4>}, {pipeline_mode = #tpu.pipeline_mode<synchronous>, transform_indices = @transform_6, window_bounds = array<i64: 8, 4>}, {transform_indices = @transform_7, window_bounds = array<i64: 1, 8, 32>}]} {
    %c0 = arith.constant 0 : index
    %c0_0 = arith.constant 0 : index
    %c0_1 = arith.constant 0 : index
    %0 = vector.load %arg1[%c0, %c0_0, %c0_1] : memref<1x8x32xf32, #tpu.memory_space<vmem>>, vector<1x8x32xf32>
    %1 = vector.shape_cast %0 : vector<1x8x32xf32> to vector<8x32xf32>
    %cst = arith.constant dense<0.000000e+00> : vector<8xf32>
    %2 = vector.multi_reduction <add>, %1, %cst [1] : vector<8x32xf32> to vector<8xf32>
    %3 = vector.shape_cast %2 : vector<8xf32> to vector<8x1xf32>
    %cst_2 = arith.constant 3.200000e+01 : f32
    %4 = vector.broadcast %cst_2 : f32 to vector<8x1xf32>
    %5 = arith.divf %3, %4 : vector<8x1xf32>
    %6 = vector.broadcast %5 : vector<8x1xf32> to vector<8x32xf32>
    %7 = arith.subf %1, %6 : vector<8x32xf32>
    %8 = arith.mulf %7, %7 : vector<8x32xf32>
    %cst_3 = arith.constant dense<0.000000e+00> : vector<8xf32>
    %9 = vector.multi_reduction <add>, %8, %cst_3 [1] : vector<8x32xf32> to vector<8xf32>
    %10 = vector.shape_cast %9 : vector<8xf32> to vector<8x1xf32>
    %cst_4 = arith.constant 3.200000e+01 : f32
    %11 = vector.broadcast %cst_4 : f32 to vector<8x1xf32>
    %12 = arith.divf %10, %11 : vector<8x1xf32>
    %cst_5 = arith.constant 9.99999974E-6 : f32
    %13 = vector.broadcast %cst_5 : f32 to vector<8x1xf32>
    %14 = arith.addf %12, %13 : vector<8x1xf32>
    %15 = math.rsqrt %14 : vector<8x1xf32>
    %16 = vector.broadcast %15 : vector<8x1xf32> to vector<8x32xf32>
    %17 = arith.mulf %7, %16 : vector<8x32xf32>
    %c0_6 = arith.constant 0 : index
    %c0_7 = arith.constant 0 : index
    %18 = vector.load %arg2[%c0_6, %c0_7] : memref<1x32xf32, #tpu.memory_space<vmem>>, vector<1x32xf32>
    %19 = vector.broadcast %18 : vector<1x32xf32> to vector<8x32xf32>
    %20 = arith.mulf %17, %19 : vector<8x32xf32>
    %c0_8 = arith.constant 0 : index
    %c0_9 = arith.constant 0 : index
    %21 = vector.load %arg3[%c0_8, %c0_9] : memref<1x32xf32, #tpu.memory_space<vmem>>, vector<1x32xf32>
    %22 = vector.broadcast %21 : vector<1x32xf32> to vector<8x32xf32>
    %23 = arith.addf %20, %22 : vector<8x32xf32>
    %24 = arith.truncf %23 : vector<8x32xf32> to vector<8x32xbf16>
    %c0_10 = arith.constant 0 : index
    %c0_11 = arith.constant 0 : index
    %25 = vector.load %arg4[%c0_10, %c0_11] : memref<32x96xbf16, #tpu.memory_space<vmem>>, vector<32x96xbf16>
    %cst_12 = arith.constant dense<0.000000e+00> : vector<8x96xf32>
    %26 = tpu.matmul %24, %25, %cst_12 {dimension_numbers = #tpu.dot_dimension_numbers<[1], [0], [0], [1], [0, 0, 1, 1], [], []>} : vector<8x32xbf16>, vector<32x96xbf16>, vector<8x96xf32> -> vector<8x96xf32>
    %27 = vector.extract_strided_slice %26 {offsets = [0, 0], sizes = [8, 32], strides = [1, 1]} : vector<8x96xf32> to vector<8x32xf32>
    %28 = vector.shape_cast %27 : vector<8x32xf32> to vector<8x2x16xf32>
    %29 = tpu.transpose %28, [1, 0, 2] : vector<8x2x16xf32> -> vector<2x8x16xf32>
    %30 = vector.extract_strided_slice %26 {offsets = [0, 32], sizes = [8, 32], strides = [1, 1]} : vector<8x96xf32> to vector<8x32xf32>
    %31 = vector.shape_cast %30 : vector<8x32xf32> to vector<8x2x16xf32>
    %32 = tpu.transpose %31, [1, 0, 2] : vector<8x2x16xf32> -> vector<2x8x16xf32>
    %33 = vector.extract_strided_slice %26 {offsets = [0, 64], sizes = [8, 32], strides = [1, 1]} : vector<8x96xf32> to vector<8x32xf32>
    %34 = vector.shape_cast %33 : vector<8x32xf32> to vector<8x2x16xf32>
    %35 = tpu.transpose %34, [1, 0, 2] : vector<8x2x16xf32> -> vector<2x8x16xf32>
    %c0_13 = arith.constant 0 : index
    %c0_14 = arith.constant 0 : index
    %36 = vector.load %arg6[%c0_13, %c0_14] : memref<8x4xf32, #tpu.memory_space<vmem>>, vector<8x4xf32>
    %c0_15 = arith.constant 0 : index
    %c0_16 = arith.constant 0 : index
    %37 = vector.load %arg7[%c0_15, %c0_16] : memref<8x4xf32, #tpu.memory_space<vmem>>, vector<8x4xf32>
    %38 = vector.extract_strided_slice %29 {offsets = [0, 0, 0], sizes = [2, 8, 4], strides = [1, 1, 1]} : vector<2x8x16xf32> to vector<2x8x4xf32>
    %39 = vector.extract_strided_slice %29 {offsets = [0, 0, 4], sizes = [2, 8, 4], strides = [1, 1, 1]} : vector<2x8x16xf32> to vector<2x8x4xf32>
    %40 = vector.extract_strided_slice %29 {offsets = [0, 0, 8], sizes = [2, 8, 8], strides = [1, 1, 1]} : vector<2x8x16xf32> to vector<2x8x8xf32>
    %41 = vector.shape_cast %36 : vector<8x4xf32> to vector<1x8x4xf32>
    %42 = vector.broadcast %41 : vector<1x8x4xf32> to vector<2x8x4xf32>
    %43 = arith.mulf %38, %42 : vector<2x8x4xf32>
    %44 = vector.shape_cast %37 : vector<8x4xf32> to vector<1x8x4xf32>
    %45 = vector.broadcast %44 : vector<1x8x4xf32> to vector<2x8x4xf32>
    %46 = arith.mulf %39, %45 : vector<2x8x4xf32>
    %47 = arith.subf %43, %46 : vector<2x8x4xf32>
    %48 = vector.shape_cast %36 : vector<8x4xf32> to vector<1x8x4xf32>
    %49 = vector.broadcast %48 : vector<1x8x4xf32> to vector<2x8x4xf32>
    %50 = arith.mulf %39, %49 : vector<2x8x4xf32>
    %51 = vector.shape_cast %37 : vector<8x4xf32> to vector<1x8x4xf32>
    %52 = vector.broadcast %51 : vector<1x8x4xf32> to vector<2x8x4xf32>
    %53 = arith.mulf %38, %52 : vector<2x8x4xf32>
    %54 = arith.addf %50, %53 : vector<2x8x4xf32>
    %55 = tpu.concatenate %47, %54, %40 in 2 : vector<2x8x4xf32>, vector<2x8x4xf32>, vector<2x8x8xf32> -> vector<2x8x16xf32>
    %cst_17 = arith.constant 2.500000e-01 : f32
    %56 = vector.broadcast %cst_17 : f32 to vector<2x8x16xf32>
    %57 = arith.mulf %55, %56 : vector<2x8x16xf32>
    %58 = vector.extract_strided_slice %32 {offsets = [0, 0, 0], sizes = [2, 8, 4], strides = [1, 1, 1]} : vector<2x8x16xf32> to vector<2x8x4xf32>
    %59 = vector.extract_strided_slice %32 {offsets = [0, 0, 4], sizes = [2, 8, 4], strides = [1, 1, 1]} : vector<2x8x16xf32> to vector<2x8x4xf32>
    %60 = vector.extract_strided_slice %32 {offsets = [0, 0, 8], sizes = [2, 8, 8], strides = [1, 1, 1]} : vector<2x8x16xf32> to vector<2x8x8xf32>
    %61 = vector.shape_cast %36 : vector<8x4xf32> to vector<1x8x4xf32>
    %62 = vector.broadcast %61 : vector<1x8x4xf32> to vector<2x8x4xf32>
    %63 = arith.mulf %58, %62 : vector<2x8x4xf32>
    %64 = vector.shape_cast %37 : vector<8x4xf32> to vector<1x8x4xf32>
    %65 = vector.broadcast %64 : vector<1x8x4xf32> to vector<2x8x4xf32>
    %66 = arith.mulf %59, %65 : vector<2x8x4xf32>
    %67 = arith.subf %63, %66 : vector<2x8x4xf32>
    %68 = vector.shape_cast %36 : vector<8x4xf32> to vector<1x8x4xf32>
    %69 = vector.broadcast %68 : vector<1x8x4xf32> to vector<2x8x4xf32>
    %70 = arith.mulf %59, %69 : vector<2x8x4xf32>
    %71 = vector.shape_cast %37 : vector<8x4xf32> to vector<1x8x4xf32>
    %72 = vector.broadcast %71 : vector<1x8x4xf32> to vector<2x8x4xf32>
    %73 = arith.mulf %58, %72 : vector<2x8x4xf32>
    %74 = arith.addf %70, %73 : vector<2x8x4xf32>
    %75 = tpu.concatenate %67, %74, %60 in 2 : vector<2x8x4xf32>, vector<2x8x4xf32>, vector<2x8x8xf32> -> vector<2x8x16xf32>
    %76 = arith.truncf %57 : vector<2x8x16xf32> to vector<2x8x16xbf16>
    %77 = arith.truncf %75 : vector<2x8x16xf32> to vector<2x8x16xbf16>
    "tpu.trace_start"() <{level = 10 : i32, message = "hqd,hkd->hqk"}> : () -> ()
    %cst_18 = arith.constant dense<0.000000e+00> : vector<2x8x8xf32>
    %78 = tpu.matmul %76, %77, %cst_18 {dimension_numbers = #tpu.dot_dimension_numbers<[2], [2], [1], [1], [0, 0, 0, 1, 1, 1], [0], [0]>} : vector<2x8x16xbf16>, vector<2x8x16xbf16>, vector<2x8x8xf32> -> vector<2x8x8xf32>
    "tpu.trace_stop"() : () -> ()
    %79 = tpu.iota {dimensions = array<i32: 0>} : vector<8x8xi32>
    %80 = tpu.iota {dimensions = array<i32: 1>} : vector<8x8xi32>
    %81 = arith.cmpi sle, %80, %79 : vector<8x8xi32>
    %cst_19 = arith.constant -1.000000e+30 : f32
    %82 = vector.shape_cast %81 : vector<8x8xi1> to vector<1x8x8xi1>
    %83 = vector.broadcast %82 : vector<1x8x8xi1> to vector<2x8x8xi1>
    %84 = vector.broadcast %cst_19 : f32 to vector<2x8x8xf32>
    %85 = arith.select %83, %78, %84 : vector<2x8x8xi1>, vector<2x8x8xf32>
    %cst_20 = arith.constant dense<0xFF800000> : vector<2x8xf32>
    %86 = vector.multi_reduction <maximumf>, %85, %cst_20 [2] : vector<2x8x8xf32> to vector<2x8xf32>
    %87 = vector.shape_cast %86 : vector<2x8xf32> to vector<2x8x1xf32>
    %88 = vector.broadcast %87 : vector<2x8x1xf32> to vector<2x8x8xf32>
    %89 = arith.subf %85, %88 : vector<2x8x8xf32>
    %90 = math.exp %89 : vector<2x8x8xf32>
    %cst_21 = arith.constant dense<0.000000e+00> : vector<2x8xf32>
    %91 = vector.multi_reduction <add>, %90, %cst_21 [2] : vector<2x8x8xf32> to vector<2x8xf32>
    %92 = vector.shape_cast %91 : vector<2x8xf32> to vector<2x8x1xf32>
    %93 = arith.truncf %90 : vector<2x8x8xf32> to vector<2x8x8xbf16>
    %94 = arith.truncf %35 : vector<2x8x16xf32> to vector<2x8x16xbf16>
    "tpu.trace_start"() <{level = 10 : i32, message = "hqk,hkd->hqd"}> : () -> ()
    %cst_22 = arith.constant dense<0.000000e+00> : vector<2x8x16xf32>
    %95 = tpu.matmul %93, %94, %cst_22 {dimension_numbers = #tpu.dot_dimension_numbers<[2], [1], [1], [2], [0, 0, 0, 1, 1, 2], [0], [0]>} : vector<2x8x8xbf16>, vector<2x8x16xbf16>, vector<2x8x16xf32> -> vector<2x8x16xf32>
    "tpu.trace_stop"() : () -> ()
    %96 = tpu.reciprocal %92 {approx = true} : vector<2x8x1xf32> -> vector<2x8x1xf32>
    %97 = vector.broadcast %96 : vector<2x8x1xf32> to vector<2x8x16xf32>
    %98 = arith.mulf %95, %97 : vector<2x8x16xf32>
    %99 = tpu.transpose %98, [1, 0, 2] : vector<2x8x16xf32> -> vector<8x2x16xf32>
    %100 = vector.shape_cast %99 : vector<8x2x16xf32> to vector<8x32xf32>
    %101 = arith.truncf %100 : vector<8x32xf32> to vector<8x32xbf16>
    %c0_23 = arith.constant 0 : index
    %c0_24 = arith.constant 0 : index
    %102 = vector.load %arg5[%c0_23, %c0_24] : memref<32x32xbf16, #tpu.memory_space<vmem>>, vector<32x32xbf16>
    %cst_25 = arith.constant dense<0.000000e+00> : vector<8x32xf32>
    %103 = tpu.matmul %101, %102, %cst_25 {dimension_numbers = #tpu.dot_dimension_numbers<[1], [0], [0], [1], [0, 0, 1, 1], [], []>} : vector<8x32xbf16>, vector<32x32xbf16>, vector<8x32xf32> -> vector<8x32xf32>
    %c0_26 = arith.constant 0 : index
    %c0_27 = arith.constant 0 : index
    %c0_28 = arith.constant 0 : index
    %104 = vector.load %arg8[%c0_26, %c0_27, %c0_28] : memref<1x8x32xf32, #tpu.memory_space<vmem>>, vector<1x8x32xf32>
    %105 = vector.shape_cast %104 : vector<1x8x32xf32> to vector<8x32xf32>
    %106 = vector.shape_cast %103 : vector<8x32xf32> to vector<1x8x32xf32>
    tpu.vector_store %arg8[%c0_26, %c0_27, %c0_28], %106 {strides = array<i32>} : memref<1x8x32xf32, #tpu.memory_space<vmem>>, vector<1x8x32xf32>,
    return
  }
  func.func @transform_0(%arg0: i32) -> (i32, i32, i32) {
    %c0_i32 = arith.constant 0 : i32
    %c0_i32_0 = arith.constant 0 : i32
    %c0_i32_1 = arith.constant 0 : i32
    return %arg0, %c0_i32, %c0_i32_0 : i32, i32, i32
  }
  func.func @transform_1(%arg0: i32) -> (i32, i32) {
    %c0_i32 = arith.constant 0 : i32
    %c0_i32_0 = arith.constant 0 : i32
    %c0_i32_1 = arith.constant 0 : i32
    return %c0_i32, %c0_i32_0 : i32, i32
  }
  func.func @transform_2(%arg0: i32) -> (i32, i32) {
    %c0_i32 = arith.constant 0 : i32
    %c0_i32_0 = arith.constant 0 : i32
    %c0_i32_1 = arith.constant 0 : i32
    return %c0_i32, %c0_i32_0 : i32, i32
  }
  func.func @transform_3(%arg0: i32) -> (i32, i32) {
    %c0_i32 = arith.constant 0 : i32
    %c0_i32_0 = arith.constant 0 : i32
    %c0_i32_1 = arith.constant 0 : i32
    return %c0_i32, %c0_i32_0 : i32, i32
  }
  func.func @transform_4(%arg0: i32) -> (i32, i32) {
    %c0_i32 = arith.constant 0 : i32
    %c0_i32_0 = arith.constant 0 : i32
    %c0_i32_1 = arith.constant 0 : i32
    return %c0_i32, %c0_i32_0 : i32, i32
  }
  func.func @transform_5(%arg0: i32) -> (i32, i32) {
    %c0_i32 = arith.constant 0 : i32
    %c0_i32_0 = arith.constant 0 : i32
    %c0_i32_1 = arith.constant 0 : i32
    return %c0_i32, %c0_i32_0 : i32, i32
  }
  func.func @transform_6(%arg0: i32) -> (i32, i32) {
    %c0_i32 = arith.constant 0 : i32
    %c0_i32_0 = arith.constant 0 : i32
    %c0_i32_1 = arith.constant 0 : i32
    return %c0_i32, %c0_i32_0 : i32, i32
  }
  func.func @transform_7(%arg0: i32) -> (i32, i32, i32) {
    %c0_i32 = arith.constant 0 : i32
    %c0_i32_0 = arith.constant 0 : i32
    %c0_i32_1 = arith.constant 0 : i32
    return %arg0, %c0_i32, %c0_i32_0 : i32, i32, i32
  }
}

</mosaic_0001>

<bundles_post_ra>
// kernel: tpu_custom_call.1
= control target key start
LH: loop header
LB: loop body
LE: loop exit
PB: predicated region body
PF: predicated region fallthrough
CT: control target
= control target key end

     0   :  { %12 = vsyncpa [#allocation3], 0  ;;  %s2014_s0 = inlined_call_operand.vmem [shape: f32[2,8,32], index: 0, kind: input, shape index: {}]   ;;  %s2015_s1 = inlined_call_operand.vmem [shape: f32[1,32], index: 1, kind: input, shape index: {}]   ;;  %s2016_s2 = inlined_call_operand.vmem [shape: f32[1,32], index: 2, kind: input, shape index: {}]   ;;  %s2017_s3 = inlined_call_operand.hbm [shape: bf16[32,96], index: 3, kind: input, shape index: {}]   ;;  %s2018_s4 = inlined_call_operand.hbm [shape: bf16[32,32], index: 4, kind: input, shape index: {}]   ;;  %s2019_s5 = inlined_call_operand.vmem [shape: f32[8,4], index: 5, kind: input, shape index: {}]   ;;  %s2020_s6 = inlined_call_operand.vmem [shape: f32[8,4], index: 6, kind: input, shape index: {}]   ;;  %s2021_s7 = inlined_call_operand.hbm [shape: f32[2,8,32], index: 7, kind: output, shape index: {}]  }
   0x1   :  { %13 = vsyncpa [#allocation6], 0 }
   0x2   :  { %14 = vsyncpa [#allocation4], 0 }
   0x3   :  { %16 = vsyncpa [#allocation4 + $0x1], 0  ;;  %s1692_s24 = smov 0   ;;  %s1694_s25 = smov 0  }
   0x4   :  { %s1696_s26 = smov 0   ;;  %s1698_s27 = smov 0  }
   0x5 LB: > { %s1713_s28 = sadd.s32 4294967295, %s1635_s27   ;;  %s1341_s29 = sadd.s32 4294967294, %s1635_s27   ;;  %s1635_s27 = sphi %s1698_s27, %s2035_s27   ;;  %s1631_s26 = sphi %s1696_s26, %s2034_s26   ;;  %s1627_s25 = sphi %s1694_s25, %s2033_s25   ;;  %s1623_s24 = sphi %s1692_s24, %s2032_s24  }
   0x6   : > { %s1717_s30 = sadd.s32 1, %s1635_s27   ;;  %s181_s8 = sadd.s32 1, %s1631_s26 }
   0x7   : > { %s178_s9 = ssub.s32 %s1635_s27, %s1717_s30  ;;  %p191_p0 = scmp.ne.s32.totalorder %s1631_s26, %s1627_s25 }
   0x8   : > { %p179_p1 = scmp.eq.s32.totalorder %s178_s9, 0  ;;  %p192_p2 = scmp.eq.s32.totalorder %s1713_s28, 1 }
   0x9   : > { %p197_p3 = scmp.ne.s32.totalorder %s1627_s25, %s1623_s24  ;;  %p198_p4 = scmp.eq.s32.totalorder %s1341_s29, 1 }
   0xa   : > { %s1728_s10 = scalar_select %p179_p1, %s1631_s26, %s181_s8  }
   0xb   : > { %p1730_p5 = por %p192_p2, %p191_p0  ;;  %p1734_p6 = por %p198_p4, %p197_p3 }
   0xc   : > { %p1342_p7 = scmp.ge.s32.totalorder %s1635_s27, 1  ;;  %p205_p8 = scmp.lt.s32.totalorder %s1635_s27, 3 }
   0xd   : > { %s2024_s12 = scalar_select %p1734_p6, 1, 0 }
   0xe   : > { %p2022_p9 = scmp.eq.s32.totalorder %s1713_s28, 0  ;;  %p1741_p10 = pnand %p1342_p7, %p205_p8 }
   0xf   : > { %s1637_s14 = smov [#allocation2]   ;;  %s1638_s17 = smov [#allocation5]  }
  0x10   : > { %s223_s15 = sshll.u32 %s1637_s14, 4  ;;  %p1439_p11 = pneg %p1741_p10  ;;  %s224_s15 = int_to_ptr.vmem [resolvable:$true] %s223_s15 }
  0x11   : > { %s236_s18 = sshll.u32 %s1638_s17, 4  ;;  %s1526_s19 = scalar_lea.vmem %s224_s15, 256  ;;  %s237_s18 = int_to_ptr.vmem [resolvable:$true] %s236_s18 }
  0x12   : > { %p1749_p12 = pnand %p2022_p9, %p1439_p11  ;;  %p1527_p0 = scmp.ne.s32.totalorder %s224_s15, %s1526_s19 }
  0x13   : > { %p1534_p3 = scmp.lt.s32.totalorder %s224_s15, %s224_s15  ;;  %p1535_p4 = scmp.lt.s32.totalorder %s1526_s19, %s1526_s19 }
  0x14   : > { %p1517_p13 = pneg %p1749_p12 }
  0x15   : > { %p1536_p7 = por %p1535_p4, %p1534_p3 }
  0x16   : > { %p1529_p1 = pnand %p1527_p0, %p1517_p13 }
  0x18   : > { %p1530_p2 = pneg %p1529_p1 }
  0x1a   : > { %p1537_p8 = pnand %p1536_p7, %p1530_p2 }
  0x1c   : > { %1540 = shalt.err (!%p1537_p8)
}
  0x1d   : > { %s1639_s20 = smov 64   ;;  %s1640_s21 = smov 4  }
  0x1e   : > { %1442 = dma.hbm_to_vmem [thread:$0]  (!%p1749_p12), %s2017_s3, 256, %s224_s15, [#allocation3], %s1639_s20, %s1639_s20, %s1640_s21  }
  0x1f   : > { %s1552_s29 = scalar_lea.vmem %s237_s18, 256  ;;  %p1560_p9 = scmp.lt.s32.totalorder %s237_s18, %s237_s18 }
  0x20   : > { %p1553_p11 = scmp.ne.s32.totalorder %s237_s18, %s1552_s29  ;;  %p1561_p6 = scmp.lt.s32.totalorder %s1552_s29, %s1552_s29 }
  0x22   : > { %p1555_p0 = pnand %p1553_p11, %p1517_p13  ;;  %p1562_p3 = por %p1561_p6, %p1560_p9 }
  0x24   : > { %p1556_p1 = pneg %p1555_p0 }
  0x26   : > { %p1563_p2 = pnand %p1562_p3, %p1556_p1 }
  0x28   : > { %1566 = shalt.err (!%p1563_p2)
}
  0x29   : > { %1445 = dma.hbm_to_vmem [thread:$0]  (!%p1749_p12), %s2018_s4, 256, %s237_s18, [#allocation6], %s1639_s20, %s1639_s20, %s1640_s21  }
  0x2a   : > { %265 = sbr.rel (%p1741_p10) target bundleno = 1855 (0x73f), region = 48  ;;  %p2027_p4 = scmp.eq.s32.totalorder (!%p1741_p10), %s1713_s28, 0 }
  0x2f   : > { %1610 = dma.done.wait (%p2027_p4), [#allocation3], 256   ;;  %p2028_p13 = pmov %p2027_p4 }
  0x30   : > { %p2029_p7 = pmov %p2027_p4 }
  0x31   : > { %1612 = vsyncadd (%p2028_p13), [#allocation3], 4294967040 }
  0x32   : > { %1614 = dma.done.wait (%p2029_p7), [#allocation6], 256   ;;  %p2030_p6 = pmov %p2027_p4 }
  0x33   : > { %p300_p9 = scmp.lt.s32.totalorder %s1713_s28, 1  ;;  %vm306_vm0 = vcmask 261120   ;;  %v1501_v7 = vld [vmem:[#allocation2 + $0x8] sm:$0xff]   ;;  %v1641_v8 = vmov 0.0   ;;  %vm1642_vm1 = vmmov 0   ;;  %v1502_v9 = vld [vmem:[#allocation2] sm:$0xff]   ;;  %v405_v28 = vlaneseq }
  0x34   : > { %1616 = vsyncadd (%p2030_p6), [#allocation6], 4294967040  ;;  %1389 = vmatprep.subr.bf16.mxu0 %v1641_v8  ;;  %1393 = vmatprep.mubr.msk.bf16.mxu0 %vm1642_vm1, %v1641_v8  ;;  %v1351_v14 = vld [vmem:[%s2015_s1] ss:$0 sm:$0xff]  ;;  %s1643_s22 = smov 112   ;;  %s1644_s23 = smov 96  }
  0x35   : > { %s301_s14 = scalar_select %p300_p9, %s1713_s28, 1  ;;  %1390 = vmatpush3.bf16.msra.mxu0 %v1501_v7  ;;  %1397 = vmatprep.subr.bf16.mxu1 %v1641_v8  ;;  %v1352_v16 = vld [vmem:[%s2016_s2] ss:$0 sm:$0xff]  ;;  %v1646_v26 = vmov 1983009808   ;;  %v1824_v30 = vshrl.u32 %v405_v28, 7 }
  0x36   : > { %1391 = vmatprep.subr.bf16.mxu0 %v1641_v8  ;;  %1399 = vmatprep.mubr.msk.bf16.mxu1 %vm1642_vm1, %v1641_v8  ;;  %v1812_v24 = vld [vmem:[%s2020_s6] sm:$0xff]  ;;  %s1645_s9 = smov 4   ;;  %v403_v27 = vunpack.c.l.s4 %v1646_v26  ;;  %v1647_v31 = vmov 1934713408   ;;  %s1648_s16 = smov 124   ;;  %vm799_vm2 = vcmask 31744  }
  0x37   : > { %s1350_s15 = sshll.u32 %s301_s14, 3  ;;  %v1819_v25 = vld [vmem:[%s2019_s5] sm:$0xff]  ;;  %v434_v32 = vunpack.c.l.s4 %v1647_v31  ;;  %vm802_vm3 = vcmask 64512   ;;  %vm843_vm4 = vcmask 130048   ;;  %s1649_s13 = smov 64   ;;  %vm970_vm6 = vcmask 1043456  }
  0x38   : > { %s303_s17 = scalar_lea.vmem %s2014_s0, %s1350_s15  ;;  %v404_v29 = vunpack.c.0.s8 %v403_v27  ;;  %s297_s18 = sand.u32 1, %s1627_s25  }
  0x39   : > { %v305_v0 = vld [vmem:[%s303_s17] sm:$0xff]  ;;  %1392 = vmatpush3.bf16.msra.mxu0 %v1502_v9  ;;  %v435_v34 = vunpack.c.0.s8 %v434_v32  ;;  %s1650_s17 = smov 16   ;;  %s1349_s19 = sshll.u32 %s297_s18, 3 }
  0x3a   : > { %v307_v1 = vsel %vm306_vm0, %v305_v0, 0.0  ;;  %1403 = vmatprep.subr.bf16.mxu0 %v1641_v8  ;;  %v1827_v33 = vsub.s32 %v404_v29, %v1824_v30  ;;  %s1372_s20 = sshll.u32 %s1713_s28, 7  ;;  %s299_s21 = scalar_lea.vmem [#allocation7], %s1349_s19 }
  0x3b   : > { %308 = vadd.xlane.f32.xlu0 %v307_v1  ;;  %v1836_v38 = vsub.s32 %v435_v34, %v1824_v30  ;;  %s1972_s8 = scalar_lea.hbm %s2021_s7, %s1372_s20  ;;  %s1651_s28 = smov [#allocation7]  }
  0x3c   : > { %s1571_s15 = sshll.u32 %s1651_s28, 4  ;;  %s1572_s15 = int_to_ptr.vmem [resolvable:$false] %s1571_s15 }
  0xc4   : > { %v309_v2 = vpop.xlane.xlu0 %308 }
  0xc5   : > { %v311_v3 = vmul.f32 0.03125, %v309_v2 }
  0xc7   : > { %v312_v4 = vsub.f32 %v305_v0, %v311_v3 }
  0xc9   : > { %v313_v5 = vmul.f32 %v312_v4, %v312_v4 }
  0xcb   : > { %v314_v6 = vsel %vm306_vm0, %v313_v5, 0.0 }
  0xcc   : > { %315 = vadd.xlane.f32.xlu0 %v314_v6 }
 0x155   : > { %v316_v10 = vpop.xlane.xlu0 %315 }
 0x156   : > { %v317_v11 = vmul.f32 0.03125, %v316_v10 }
 0x158   : > { %v318_v12 = vadd.f32 1e-05, %v317_v11 }
 0x15a   : > { %1505 = vrsqrt.f32 %v318_v12 }
 0x167   : > { %v1506_v13 = vpop.eup %1505 }
 0x168   : > { %v320_v15 = vmul.f32 %v1506_v13, %v312_v4 }
 0x16a   : > { %v328_v17 = vmul.f32 %v1351_v14, %v320_v15 }
 0x16c   : > { %v336_v18 = vadd.f32 %v1352_v16, %v328_v17 }
 0x16e   : > { %v337_v19 = vpack.c.bf16 %v336_v18, %v336_v18 }
 0x170   : > { %1394 = vmatmul.mubr.msk.bf16.vlgmr.msra.gmra.mxu0 %vm306_vm0, %v337_v19 }
 0x171   : > { %1405 = vmatprep.mubr.msk.bf16.mxu0 %vm1642_vm1, %v1641_v8 }
 0x230   : > { %v1805_v20 = vpop.f32.mrf.mxu0 }
 0x231   : > { %398 = vrot.lane.b32.xlu1 %v1805_v20, %s1643_s22  ;;  %v401_v35 = vcombine.high %v1805_v20, %v1641_v8  ;;  %v408_v37 = vrot.slane %v1805_v20, %v1827_v33  ;;  %s1260_s22 = sshll.u32 %s299_s21, 4  ;;  %s1974_s22 = int_to_ptr.vmem [resolvable:$true] %s1260_s22 }
 0x232   : > { %v1395_v21 = vpop.f32.mrf.mxu0  ;;  %s1567_s14 = scalar_lea.vmem %s1974_s22, 128  ;;  %p1574_p11 = scmp.lt.s32.totalorder %s1974_s22, %s1572_s15 }
 0x233   : > { %v415_v41 = vrot.slane %v401_v35, %v1827_v33  ;;  %p1568_p10 = scmp.ne.s32.totalorder %s1974_s22, %s1567_s14 }
 0x234   : > { %v394_v22 = vpop.f32.mrf.mxu0 }
 0x235   : > { %517 = vrot.lane.b32.xlu1 %v1805_v20, %s1644_s23  ;;  %p1569_p12 = pnand %p1568_p10, %p1730_p5 }
 0x236   : > { %v1396_v23 = vpop.f32.mrf.mxu0 }
 0x237   : > { %p1570_p8 = pneg %p1569_p12 }
 0x239   : > { %766 = vrot.lane.b32.xlu1 %v1812_v24, %s1645_s9 }
 0x23d   : > { %782 = vrot.lane.b32.xlu1 %v1819_v25, %s1645_s9 }
 0x2a3   : > { %v1831_v36 = vpop.permute.xlu1 %398 }
 0x2a4   : > { %v416_v39 = vcombine.high %v1831_v36, %v1641_v8  ;;  %v423_v40 = vrot.slane %v1831_v36, %v1827_v33  ;;  %519 = vrot.lane.b32.xlu0 %v1831_v36, %s1644_s23 }
 0x2a6   : > { %v430_v42 = vrot.slane %v416_v39, %v1827_v33  ;;  %v431_v43 = vcombine.low %v408_v37, %v423_v40  ;;  %v432_v44 = vcombine.high %v408_v37, %v423_v40 }
 0x2a7   : > { %v518_v61 = vpop.permute.xlu1 %517 }
 0x2a8   : > { %v439_v45 = vrot.slane %v431_v43, %v1836_v38  ;;  %v446_v46 = vrot.slane %v432_v44, %v1836_v38  ;;  %v447_v47 = vcombine.low %v415_v41, %v430_v42  ;;  %v448_v48 = vcombine.high %v415_v41, %v430_v42 }
 0x2a9   : > { %v523_v5 = vcombine.high %v518_v61, %v1641_v8  ;;  %v530_v7 = vrot.slane %v518_v61, %v1827_v33 }
 0x2aa   : > { %v455_v49 = vrot.slane %v447_v47, %v1836_v38  ;;  %v462_v50 = vrot.slane %v448_v48, %v1836_v38  ;;  %v467_v51 = vcombine.low %v439_v45, %v446_v46  ;;  %v1356_v52 = vcombine.high %v439_v45, %v446_v46 }
 0x2ab   : > { %v767_v2 = vpop.permute.xlu1 %766  ;;  %v537_v11 = vrot.slane %v523_v5, %v1827_v33 }
 0x2ac   : > { %v474_v53 = vrot.slane %v467_v51, %v1827_v33  ;;  %v482_v54 = vrot.slane %v1356_v52, %v1827_v33  ;;  %v483_v55 = vcombine.low %v455_v49, %v462_v50  ;;  %v1357_v56 = vcombine.high %v455_v49, %v462_v50 }
 0x2ae   : > { %v490_v57 = vrot.slane %v483_v55, %v1827_v33  ;;  %v498_v58 = vrot.slane %v1357_v56, %v1827_v33  ;;  %v499_v59 = vcombine.low %v474_v53, %v482_v54 }
 0x2af   : > { %v783_v49 = vpop.permute.xlu1 %782 }
 0x2b0   : > { %v507_v60 = vcombine.low %v490_v57, %v498_v58  ;;  %v506_v62 = vrot.slane %v499_v59, %v1836_v38 }
 0x2b2   : > { %v514_v63 = vrot.slane %v507_v60, %v1836_v38 }
 0x2b4   : > { %v1855_v0 = vcombine.low %v506_v62, %v514_v63  ;;  %v1857_v1 = vcombine.high %v506_v62, %v514_v63 }
 0x2b6   : > { %v769_v3 = vmul.f32 %v767_v2, %v1855_v0  ;;  %v787_v4 = vmul.f32 %v1812_v24, %v1855_v0  ;;  %v770_v47 = vmul.f32 %v767_v2, %v1857_v1  ;;  %v788_v48 = vmul.f32 %v1812_v24, %v1857_v1 }
 0x2b7   : > { %v785_v54 = vmul.f32 %v783_v49, %v1855_v0  ;;  %v763_v55 = vmul.f32 %v1819_v25, %v1855_v0 }
 0x2b8   : > { %773 = vrot.lane.b32.xlu0 %v769_v3, %s1648_s16 }
 0x2bc   : > { %791 = vrot.lane.b32.xlu0 %v787_v4, %s1645_s9 }
 0x316   : > { %v520_v6 = vpop.permute.xlu0 %519 }
 0x317   : > { %v538_v9 = vcombine.high %v520_v6, %v1641_v8  ;;  %v545_v10 = vrot.slane %v520_v6, %v1827_v33 }
 0x319   : > { %v552_v12 = vrot.slane %v538_v9, %v1827_v33  ;;  %v553_v13 = vcombine.low %v530_v7, %v545_v10  ;;  %v554_v14 = vcombine.high %v530_v7, %v545_v10 }
 0x31b   : > { %v561_v15 = vrot.slane %v553_v13, %v1836_v38  ;;  %v568_v16 = vrot.slane %v554_v14, %v1836_v38  ;;  %v569_v17 = vcombine.low %v537_v11, %v552_v12  ;;  %v570_v18 = vcombine.high %v537_v11, %v552_v12 }
 0x31d   : > { %v577_v19 = vrot.slane %v569_v17, %v1836_v38  ;;  %v584_v21 = vrot.slane %v570_v18, %v1836_v38  ;;  %v589_v22 = vcombine.low %v561_v15, %v568_v16  ;;  %v1358_v23 = vcombine.high %v561_v15, %v568_v16 }
 0x31e   : > { %v764_v17 = vmul.f32 %v1819_v25, %v1857_v1 }
 0x31f   : > { %v596_v26 = vrot.slane %v589_v22, %v1827_v33  ;;  %v604_v27 = vrot.slane %v1358_v23, %v1827_v33  ;;  %v605_v29 = vcombine.low %v577_v19, %v584_v21  ;;  %v1359_v31 = vcombine.high %v577_v19, %v584_v21 }
 0x320   : > { %v786_v19 = vmul.f32 %v783_v49, %v1857_v1 }
 0x321   : > { %v612_v32 = vrot.slane %v605_v29, %v1827_v33  ;;  %v620_v34 = vrot.slane %v1359_v31, %v1827_v33  ;;  %v621_v35 = vcombine.low %v596_v26, %v604_v27  ;;  %v939_v31 = vand.u32 127, %v405_v28 }
 0x323   : > { %v629_v37 = vcombine.low %v612_v32, %v620_v34  ;;  %v628_v39 = vrot.slane %v621_v35, %v1836_v38  ;;  %vm940_vm5 = vcmp.le.s32.totalorder %v939_v31, %v1824_v30 }
 0x325   : > { %v636_v40 = vrot.slane %v629_v37, %v1836_v38 }
 0x327   : > { %v637_v41 = vcombine.low %v628_v39, %v636_v40  ;;  %v638_v42 = vcombine.high %v628_v39, %v636_v40 }
 0x329   : > { %v809_v43 = vmul.f32 %v767_v2, %v637_v41  ;;  %v810_v44 = vmul.f32 %v767_v2, %v638_v42  ;;  %v823_v45 = vmul.f32 %v1812_v24, %v637_v41  ;;  %v824_v46 = vmul.f32 %v1812_v24, %v638_v42 }
 0x32a   : > { %v774_v50 = vpop.permute.xlu0 %773  ;;  %v807_v57 = vmul.f32 %v1819_v25, %v637_v41  ;;  %v821_v58 = vmul.f32 %v783_v49, %v637_v41  ;;  %v808_v63 = vmul.f32 %v1819_v25, %v638_v42  ;;  %v822_v2 = vmul.f32 %v783_v49, %v638_v42 }
 0x32b   : > { %813 = vrot.lane.b32.xlu1 %v809_v43, %s1648_s16  ;;  %v779_v60 = vsub.f32 %v763_v55, %v774_v50 }
 0x32e   : > { %v792_v52 = vpop.permute.xlu0 %791 }
 0x32f   : > { %815 = vrot.lane.b32.xlu1 %v810_v44, %s1648_s16  ;;  %v797_v56 = vadd.f32 %v792_v52, %v785_v54 }
 0x331   : > { %v800_v62 = vsel %vm799_vm2, %v779_v60, %v797_v56 }
 0x332   : > { %v803_v10 = vsel %vm802_vm3, %v800_v62, %v1855_v0 }
 0x333   : > { %827 = vrot.lane.b32.xlu1 %v823_v45, %s1645_s9  ;;  %v805_v15 = vmul.f32 0.25, %v803_v10 }
 0x335   : > { %v839_v23 = vpack.c.bf16 %v805_v15, %v805_v15 }
 0x337   : > { %829 = vrot.lane.b32.xlu1 %v824_v46, %s1645_s9 }
 0x33b   : > { %775 = vrot.lane.b32.xlu1 %v770_v47, %s1648_s16  ;;  %s1573_s16 = scalar_lea.vmem %s1572_s15, 256 }
 0x33c   : > { %p1575_p0 = scmp.lt.s32.totalorder %s1573_s16, %s1567_s14 }
 0x33e   : > { %p1576_p1 = por %p1575_p0, %p1574_p11 }
 0x33f   : > { %793 = vrot.lane.b32.xlu1 %v788_v48, %s1645_s9  ;;  %s1247_s9 = scalar_lea.sflag [#allocation4], %s297_s18 }
 0x340   : > { %p1577_p3 = pnand %p1576_p1, %p1570_p8 }
 0x39d   : > { %v814_v51 = vpop.permute.xlu1 %813 }
 0x39e   : > { %v819_v24 = vsub.f32 %v807_v57, %v814_v51 }
 0x3a1   : > { %v816_v53 = vpop.permute.xlu1 %815 }
 0x3a2   : > { %v820_v6 = vsub.f32 %v808_v63, %v816_v53 }
 0x3a5   : > { %v828_v59 = vpop.permute.xlu1 %827 }
 0x3a6   : > { %v833_v61 = vadd.f32 %v828_v59, %v821_v58 }
 0x3a8   : > { %v835_v3 = vsel %vm799_vm2, %v819_v24, %v833_v61 }
 0x3a9   : > { %v830_v4 = vpop.permute.xlu1 %829  ;;  %v837_v5 = vsel %vm802_vm3, %v835_v3, %v637_v41 }
 0x3aa   : > { %v834_v7 = vadd.f32 %v830_v4, %v822_v2  ;;  %v841_v9 = vpack.c.bf16 %v837_v5, %v837_v5 }
 0x3ac   : > { %v836_v11 = vsel %vm799_vm2, %v820_v6, %v834_v7  ;;  %v848_v12 = vsel %vm843_vm4, %v841_v9, 0 }
 0x3ad   : > { %1398 = vmatpush3.bf16.xpose.msra.mxu1 %v848_v12  ;;  %v776_v13 = vpop.permute.xlu1 %775  ;;  %v838_v14 = vsel %vm802_vm3, %v836_v11, %v638_v42 }
 0x3ae   : > { %v842_v16 = vpack.c.bf16 %v838_v14, %v838_v14  ;;  %1409 = vmatprep.subr.bf16.mxu1 %v1641_v8  ;;  %v780_v21 = vsub.f32 %v764_v17, %v776_v13 }
 0x3b0   : > { %v894_v18 = vsel %vm843_vm4, %v842_v16, 0 }
 0x3b1   : > { %1404 = vmatpush3.bf16.xpose.msra.mxu0 %v894_v18  ;;  %v794_v0 = vpop.permute.xlu1 %793 }
 0x3b2   : > { %v798_v22 = vadd.f32 %v794_v0, %v786_v19  ;;  %1415 = vmatprep.subr.bf16.mxu0 %v1641_v8 }
 0x3b4   : > { %v801_v26 = vsel %vm799_vm2, %v780_v21, %v798_v22  ;;  %1400 = vmatmul.mubr.msk.bf16.vlgmr.msra.gmra.mxu1 %vm843_vm4, %v839_v23 }
 0x3b5   : > { %v804_v27 = vsel %vm802_vm3, %v801_v26, %v1857_v1  ;;  %1411 = vmatprep.mubr.msk.bf16.mxu1 %vm1642_vm1, %v1641_v8 }
 0x3b6   : > { %v806_v25 = vmul.f32 0.25, %v804_v27 }
 0x3b8   : > { %v840_v29 = vpack.c.bf16 %v806_v25, %v806_v25  ;;  %v1503_v25 = vld [vmem:[#allocation5 + $0x8] sm:$0xff]  }
 0x3ba   : > { %1406 = vmatmul.mubr.msk.bf16.vlgmr.msra.gmra.mxu0 %vm843_vm4, %v840_v29 }
 0x3bb   : > { %1417 = vmatprep.mubr.msk.bf16.mxu0 %vm1642_vm1, %v1641_v8 }
 0x474   : > { %v884_v32 = vpop.f32.mrf.mxu1 }
 0x475   : > { %v943_v34 = vsel %vm940_vm5, %v884_v32, -1e+30 }
 0x476   : > { %v1401_v35 = vpop.f32.mrf.mxu1  ;;  %v945_v37 = vsel %vm802_vm3, %v943_v34, -inf }
 0x477   : > { %946 = vmax.xlane.f32.xlu0 %v945_v37 }
 0x478   : > { %v887_v1 = vpop.f32.mrf.mxu1 }
 0x47a   : > { %v1402_v39 = vpop.f32.mrf.mxu1  ;;  %v930_v40 = vpop.f32.mrf.mxu0 }
 0x47b   : > { %v944_v41 = vsel %vm940_vm5, %v930_v40, -1e+30 }
 0x47c   : > { %v1407_v42 = vpop.f32.mrf.mxu0  ;;  %v948_v43 = vsel %vm802_vm3, %v944_v41, -inf }
 0x47d   : > { %949 = vmax.xlane.f32.xlu1 %v948_v43 }
 0x47e   : > { %v933_v44 = vpop.f32.mrf.mxu0 }
 0x480   : > { %v1408_v45 = vpop.f32.mrf.mxu0 }
 0x48d   : > { %639 = vrot.lane.b32.xlu0 %v1805_v20, %s1649_s13 }
 0x48e   : > { %641 = vrot.lane.b32.xlu1 %v1831_v36, %s1649_s13 }
 0x500   : > { %v947_v28 = vpop.xlane.xlu0 %946 }
 0x501   : > { %v951_v30 = vsub.f32 %v943_v34, %v947_v28 }
 0x503   : > { %v953_v46 = vmul.f32 1.442695, %v951_v30 }
 0x504   : > { %v640_v47 = vpop.permute.xlu0 %639 }
 0x505   : > { %1507 = vpow2.f32 %v953_v46  ;;  %v645_v50 = vcombine.high %v640_v47, %v1641_v8  ;;  %v652_v53 = vrot.slane %v640_v47, %v1827_v33 }
 0x506   : > { %v950_v48 = vpop.xlane.xlu1 %949 }
 0x507   : > { %v952_v49 = vsub.f32 %v944_v41, %v950_v48  ;;  %v659_v36 = vrot.slane %v645_v50, %v1827_v33 }
 0x509   : > { %v955_v51 = vmul.f32 1.442695, %v952_v49 }
 0x50a   : > { %v642_v52 = vpop.permute.xlu1 %641 }
 0x50b   : > { %1509 = vpow2.f32 %v955_v51  ;;  %v660_v54 = vcombine.high %v642_v52, %v1641_v8  ;;  %v667_v20 = vrot.slane %v642_v52, %v1827_v33 }
 0x50d   : > { %v674_v55 = vrot.slane %v660_v54, %v1827_v33  ;;  %v675_v56 = vcombine.low %v652_v53, %v667_v20  ;;  %v676_v57 = vcombine.high %v652_v53, %v667_v20 }
 0x50f   : > { %v683_v58 = vrot.slane %v675_v56, %v1836_v38  ;;  %v690_v59 = vrot.slane %v676_v57, %v1836_v38  ;;  %v691_v60 = vcombine.low %v659_v36, %v674_v55  ;;  %v692_v24 = vcombine.high %v659_v36, %v674_v55  ;;  %v1504_v36 = vld [vmem:[#allocation5] sm:$0xff]  }
 0x511   : > { %v699_v61 = vrot.slane %v691_v60, %v1836_v38  ;;  %v706_v62 = vrot.slane %v692_v24, %v1836_v38  ;;  %v711_v63 = vcombine.low %v683_v58, %v690_v59  ;;  %v1360_v2 = vcombine.high %v683_v58, %v690_v59 }
 0x512   : > { %v1508_v3 = vpop.eup %1507 }
 0x513   : > { %v718_v4 = vrot.slane %v711_v63, %v1827_v33  ;;  %v726_v5 = vrot.slane %v1360_v2, %v1827_v33  ;;  %v727_v6 = vcombine.low %v699_v61, %v706_v62  ;;  %v1361_v7 = vcombine.high %v699_v61, %v706_v62 }
 0x514   : > { %v957_v9 = vsel %vm802_vm3, %v1508_v3, 0.0  ;;  %v963_v26 = vpack.c.bf16 %v1508_v3, %v1508_v3 }
 0x515   : > { %v734_v10 = vrot.slane %v727_v6, %v1827_v33  ;;  %v742_v11 = vrot.slane %v1361_v7, %v1827_v33  ;;  %958 = vadd.xlane.f32.xlu0 %v957_v9  ;;  %v743_v12 = vcombine.low %v718_v4, %v726_v5 }
 0x517   : > { %v751_v13 = vcombine.low %v734_v10, %v742_v11  ;;  %v750_v16 = vrot.slane %v743_v12, %v1836_v38 }
 0x518   : > { %v1510_v14 = vpop.eup %1509 }
 0x519   : > { %v960_v15 = vsel %vm802_vm3, %v1510_v14, 0.0  ;;  %v758_v17 = vrot.slane %v751_v13, %v1836_v38  ;;  %v964_v27 = vpack.c.bf16 %v1510_v14, %v1510_v14 }
 0x51a   : > { %961 = vadd.xlane.f32.xlu1 %v960_v15 }
 0x51b   : > { %v759_v18 = vcombine.low %v750_v16, %v758_v17  ;;  %v760_v19 = vcombine.high %v750_v16, %v758_v17 }
 0x51d   : > { %v965_v0 = vpack.c.bf16 %v759_v18, %v759_v18  ;;  %v966_v21 = vpack.c.bf16 %v760_v19, %v760_v19 }
 0x51f   : > { %v972_v22 = vsel %vm970_vm6, %v965_v0, 0  ;;  %v1018_v23 = vsel %vm970_vm6, %v966_v21, 0 }
 0x520   : > { %1410 = vmatpush3.bf16.msra.mxu1 %v972_v22  ;;  %1416 = vmatpush3.bf16.msra.mxu0 %v1018_v23 }
 0x521   : > { %1421 = vmatprep.subr.bf16.mxu1 %v1641_v8 }
 0x523   : > { %1412 = vmatmul.mubr.msk.bf16.vlgmr.msra.gmra.mxu1 %vm802_vm3, %v963_v26  ;;  %1418 = vmatmul.mubr.msk.bf16.vlgmr.msra.gmra.mxu0 %vm802_vm3, %v964_v27 }
 0x524   : > { %1425 = vmatprep.mubr.msk.bf16.mxu1 %vm1642_vm1, %v1641_v8  ;;  %1422 = vmatpush3.bf16.msra.mxu1 %v1503_v25 }
 0x525   : > { %1423 = vmatprep.subr.bf16.mxu1 %v1641_v8 }
 0x528   : > { %1424 = vmatpush3.bf16.msra.mxu1 %v1504_v36 }
 0x59e   : > { %v959_v29 = vpop.xlane.xlu0 %958 }
 0x59f   : > { %1511 = vrcp.f32 %v959_v29 }
 0x5a3   : > { %v962_v31 = vpop.xlane.xlu1 %961 }
 0x5a4   : > { %1513 = vrcp.f32 %v962_v31 }
 0x5ac   : > { %v1512_v32 = vpop.eup %1511 }
 0x5b1   : > { %v1514_v34 = vpop.eup %1513 }
 0x5e3   : > { %v1008_v35 = vpop.f32.mrf.mxu1  ;;  %v1054_v37 = vpop.f32.mrf.mxu0 }
 0x5e4   : > { %v1062_v1 = vmul.f32 %v1512_v32, %v1008_v35  ;;  %v1063_v39 = vmul.f32 %v1514_v34, %v1054_v37 }
 0x5e5   : > { %v1413_v40 = vpop.f32.mrf.mxu1  ;;  %v1419_v41 = vpop.f32.mrf.mxu0 }
 0x5e6   : > { %v1064_v42 = vcombine.high %v1062_v1, %v1641_v8  ;;  %v1071_v43 = vrot.slane %v1062_v1, %v1827_v33  ;;  %v1079_v44 = vcombine.high %v1063_v39, %v1641_v8  ;;  %v1086_v45 = vrot.slane %v1063_v39, %v1827_v33 }
 0x5e7   : > { %v1011_v28 = vpop.f32.mrf.mxu1  ;;  %v1057_v30 = vpop.f32.mrf.mxu0 }
 0x5e8   : > { %v1078_v46 = vrot.slane %v1064_v42, %v1827_v33  ;;  %v1093_v47 = vrot.slane %v1079_v44, %v1827_v33  ;;  %v1094_v48 = vcombine.low %v1071_v43, %v1086_v45  ;;  %v1095_v49 = vcombine.high %v1071_v43, %v1086_v45 }
 0x5e9   : > { %v1414_v50 = vpop.f32.mrf.mxu1  ;;  %v1420_v51 = vpop.f32.mrf.mxu0 }
 0x5ea   : > { %v1102_v52 = vrot.slane %v1094_v48, %v1836_v38  ;;  %v1109_v53 = vrot.slane %v1095_v49, %v1836_v38  ;;  %v1110_v54 = vcombine.low %v1078_v46, %v1093_v47  ;;  %v1111_v20 = vcombine.high %v1078_v46, %v1093_v47 }
 0x5ec   : > { %v1118_v8 = vrot.slane %v1110_v54, %v1836_v38  ;;  %v1125_v55 = vrot.slane %v1111_v20, %v1836_v38  ;;  %v1130_v56 = vcombine.low %v1102_v52, %v1109_v53  ;;  %v1366_v57 = vcombine.high %v1102_v52, %v1109_v53 }
 0x5ee   : > { %v1146_v58 = vcombine.low %v1118_v8, %v1125_v55  ;;  %v1367_v59 = vcombine.high %v1118_v8, %v1125_v55  ;;  %v1137_v60 = vrot.slane %v1130_v56, %v1827_v33  ;;  %v1145_v24 = vrot.slane %v1366_v57, %v1827_v33 }
 0x5f0   : > { %v1153_v61 = vrot.slane %v1146_v58, %v1827_v33  ;;  %v1161_v62 = vrot.slane %v1367_v59, %v1827_v33  ;;  %v1162_v63 = vcombine.low %v1137_v60, %v1145_v24 }
 0x5f2   : > { %v1170_v2 = vcombine.low %v1153_v61, %v1161_v62  ;;  %v1169_v3 = vrot.slane %v1162_v63, %v1836_v38 }
 0x5f4   : > { %v1177_v4 = vrot.slane %v1170_v2, %v1836_v38 }
 0x5f6   : > { %v1179_v5 = vcombine.high %v1169_v3, %v1177_v4  ;;  %v1178_v6 = vcombine.low %v1169_v3, %v1177_v4 }
 0x5f8   : > { %1181 = vrot.lane.b32.xlu0 %v1179_v5, %s1650_s17 }
 0x66a   : > { %v1182_v7 = vpop.permute.xlu0 %1181 }
 0x66b   : > { %v1184_v9 = vsel %vm843_vm4, %v1178_v6, %v1182_v7 }
 0x66c   : > { %v1185_v10 = vpack.c.bf16 %v1184_v9, %v1184_v9 }
 0x66e   : > { %1426 = vmatmul.mubr.msk.bf16.vlgmr.msra.gmra.mxu1 %vm306_vm0, %v1185_v10 }
 0x72e   : > { %v1239_v33 = vpop.f32.mrf.mxu1 }
 0x72f   : > { %1245 = vst.msk [vmem:[%s299_s21] sm:$0xff] %vm306_vm0, %v1239_v33 }
 0x730   : > { %v1427_v38 = vpop.f32.mrf.mxu1 }
 0x731   : > { %1580 = shalt.err (!%p1577_p3)
}
 0x732   : > { %s1581_s13 = scalar_lea.hbm %s1972_s8, 128  ;;  %s1585_s19 = scalar_lea.hbm %s2021_s7, 256 }
 0x733   : > { %p1582_p2 = scmp.ne.s32.totalorder %s1972_s8, %s1581_s13  ;;  %p1586_p7 = scmp.lt.s32.totalorder %s1972_s8, %s2021_s7 }
 0x734   : > { %p1587_p6 = scmp.lt.s32.totalorder %s1585_s19, %s1581_s13 }
 0x735   : > { %p1583_p4 = pnand %p1582_p2, %p1730_p5 }
 0x736   : > { %p1588_p9 = por %p1587_p6, %p1586_p7 }
 0x737   : > { %p1584_p13 = pneg %p1583_p4 }
 0x739   : > { %p1589_p10 = pnand %p1588_p9, %p1584_p13 }
 0x73b   : > { %1592 = shalt.err (!%p1589_p10)
}
 0x73c   : > { %1437 = dma.vmem_to_hbm [thread:$0]  (%p1730_p5), %s1974_s22, 128, %s1972_s8, %s1247_s9   ;;  %v1242_v11 = vpop.f32.mrf.mxu1 }
 0x73e   : > { %v1428_v12 = vpop.f32.mrf.mxu1 }
 0x73f PF: > { %p1454_p12 = scmp.ge.s32.totalorder %s1635_s27, 2  ;;  %s1272_s23 = sand.u32 1, %s1623_s24  }
 0x740   : > { %p2031_p8 = scmp.ne.s32.totalorder %s2024_s12, 0  ;;  %s1273_s29 = scalar_lea.sflag [#allocation4], %s1272_s23 }
 0x742   : > { %p1447_p11 = pnand %p1454_p12, %p2031_p8 }
 0x744   : > { %p1448_p0 = pneg %p1447_p11 }
 0x746   : > { %1618 = dma.done.wait (%p1448_p0), %s1273_s29, 128  }
 0x747   : > { %1620 = vsyncadd (%p1448_p0), %s1273_s29, 4294967168  ;;  %p19_p5 = scmp.ge.s32.totalorder %s1717_s30, 4   ;;  %s2032_s24 = smov %s1627_s25 }
 0x748   : > { %s2033_s25 = smov %s1631_s26  ;;  %s2034_s26 = smov %s1728_s10 }
 0x749   : > { %s2035_s27 = smov %s1717_s30  ;;  %21 = sbr.rel (!%p19_p5) target bundleno = 5 (0x5), region = 92 }
 0x74e   :  { %1278 = vsyncpa [#allocation3], 1 }
 0x74f   :  { %1280 = vsyncpa [#allocation3 + $0x1], 1 }
 0x750   :  { %1281 = vsyncpa [#allocation6], 1 }
 0x751   :  { %1282 = vsyncpa [#allocation4], 1 }
 0x752   :  { %1284 = vsyncpa [#allocation4 + $0x1], 1 }

// kernel: tpu_custom_call.1
= control target key start
LH: loop header
LB: loop body
LE: loop exit
PB: predicated region body
PF: predicated region fallthrough
CT: control target
= control target key end

     0   :  { %12 = vsyncpa [#allocation3], 0  ;;  %s2014_s0 = inlined_call_operand.vmem [shape: f32[2,8,32], index: 0, kind: input, shape index: {}]   ;;  %s2015_s1 = inlined_call_operand.vmem [shape: f32[1,32], index: 1, kind: input, shape index: {}]   ;;  %s2016_s2 = inlined_call_operand.vmem [shape: f32[1,32], index: 2, kind: input, shape index: {}]   ;;  %s2017_s3 = inlined_call_operand.hbm [shape: bf16[32,96], index: 3, kind: input, shape index: {}]   ;;  %s2018_s4 = inlined_call_operand.hbm [shape: bf16[32,32], index: 4, kind: input, shape index: {}]   ;;  %s2019_s5 = inlined_call_operand.vmem [shape: f32[8,4], index: 5, kind: input, shape index: {}]   ;;  %s2020_s6 = inlined_call_operand.vmem [shape: f32[8,4], index: 6, kind: input, shape index: {}]   ;;  %s2021_s7 = inlined_call_operand.hbm [shape: f32[2,8,32], index: 7, kind: output, shape index: {}]  }
   0x1   :  { %13 = vsyncpa [#allocation6], 0 }
   0x2   :  { %14 = vsyncpa [#allocation4], 0 }
   0x3   :  { %16 = vsyncpa [#allocation4 + $0x1], 0  ;;  %s1692_s24 = smov 0   ;;  %s1694_s25 = smov 0  }
   0x4   :  { %s1696_s26 = smov 0   ;;  %s1698_s27 = smov 0  }
   0x5 LB: > { %s1713_s28 = sadd.s32 4294967295, %s1635_s27   ;;  %s1341_s29 = sadd.s32 4294967294, %s1635_s27   ;;  %s1635_s27 = sphi %s1698_s27, %s2035_s27   ;;  %s1631_s26 = sphi %s1696_s26, %s2034_s26   ;;  %s1627_s25 = sphi %s1694_s25, %s2033_s25   ;;  %s1623_s24 = sphi %s1692_s24, %s2032_s24  }
   0x6   : > { %s1717_s30 = sadd.s32 1, %s1635_s27   ;;  %s181_s8 = sadd.s32 1, %s1631_s26 }
   0x7   : > { %s178_s9 = ssub.s32 %s1635_s27, %s1717_s30  ;;  %p191_p0 = scmp.ne.s32.totalorder %s1631_s26, %s1627_s25 }
   0x8   : > { %p179_p1 = scmp.eq.s32.totalorder %s178_s9, 0  ;;  %p192_p2 = scmp.eq.s32.totalorder %s1713_s28, 1 }
   0x9   : > { %p197_p3 = scmp.ne.s32.totalorder %s1627_s25, %s1623_s24  ;;  %p198_p4 = scmp.eq.s32.totalorder %s1341_s29, 1 }
   0xa   : > { %s1728_s10 = scalar_select %p179_p1, %s1631_s26, %s181_s8  }
   0xb   : > { %p1730_p5 = por %p192_p2, %p191_p0  ;;  %p1734_p6 = por %p198_p4, %p197_p3 }
   0xc   : > { %p1342_p7 = scmp.ge.s32.totalorder %s1635_s27, 1  ;;  %p205_p8 = scmp.lt.s32.totalorder %s1635_s27, 3 }
   0xd   : > { %s2024_s12 = scalar_select %p1734_p6, 1, 0 }
   0xe   : > { %p2022_p9 = scmp.eq.s32.totalorder %s1713_s28, 0  ;;  %p1741_p10 = pnand %p1342_p7, %p205_p8 }
   0xf   : > { %s1637_s14 = smov [#allocation2]   ;;  %s1638_s17 = smov [#allocation5]  }
  0x10   : > { %s223_s15 = sshll.u32 %s1637_s14, 4  ;;  %p1439_p11 = pneg %p1741_p10  ;;  %s224_s15 = int_to_ptr.vmem [resolvable:$true] %s223_s15 }
  0x11   : > { %s236_s18 = sshll.u32 %s1638_s17, 4  ;;  %s1526_s19 = scalar_lea.vmem %s224_s15, 256  ;;  %s237_s18 = int_to_ptr.vmem [resolvable:$true] %s236_s18 }
  0x12   : > { %p1749_p12 = pnand %p2022_p9, %p1439_p11  ;;  %p1527_p0 = scmp.ne.s32.totalorder %s224_s15, %s1526_s19 }
  0x13   : > { %p1534_p3 = scmp.lt.s32.totalorder %s224_s15, %s224_s15  ;;  %p1535_p4 = scmp.lt.s32.totalorder %s1526_s19, %s1526_s19 }
  0x14   : > { %p1517_p13 = pneg %p1749_p12 }
  0x15   : > { %p1536_p7 = por %p1535_p4, %p1534_p3 }
  0x16   : > { %p1529_p1 = pnand %p1527_p0, %p1517_p13 }
  0x18   : > { %p1530_p2 = pneg %p1529_p1 }
  0x1a   : > { %p1537_p8 = pnand %p1536_p7, %p1530_p2 }
  0x1c   : > { %1540 = shalt.err (!%p1537_p8)
}
  0x1d   : > { %s1639_s20 = smov 64   ;;  %s1640_s21 = smov 4  }
  0x1e   : > { %1442 = dma.hbm_to_vmem [thread:$0]  (!%p1749_p12), %s2017_s3, 256, %s224_s15, [#allocation3], %s1639_s20, %s1639_s20, %s1640_s21  }
  0x1f   : > { %s1552_s29 = scalar_lea.vmem %s237_s18, 256  ;;  %p1560_p9 = scmp.lt.s32.totalorder %s237_s18, %s237_s18 }
  0x20   : > { %p1553_p11 = scmp.ne.s32.totalorder %s237_s18, %s1552_s29  ;;  %p1561_p6 = scmp.lt.s32.totalorder %s1552_s29, %s1552_s29 }
  0x22   : > { %p1555_p0 = pnand %p1553_p11, %p1517_p13  ;;  %p1562_p3 = por %p1561_p6, %p1560_p9 }
  0x24   : > { %p1556_p1 = pneg %p1555_p0 }
  0x26   : > { %p1563_p2 = pnand %p1562_p3, %p1556_p1 }
  0x28   : > { %1566 = shalt.err (!%p1563_p2)
}
  0x29   : > { %1445 = dma.hbm_to_vmem [thread:$0]  (!%p1749_p12), %s2018_s4, 256, %s237_s18, [#allocation6], %s1639_s20, %s1639_s20, %s1640_s21  }
  0x2a   : > { %265 = sbr.rel (%p1741_p10) target bundleno = 1855 (0x73f), region = 48  ;;  %p2027_p4 = scmp.eq.s32.totalorder (!%p1741_p10), %s1713_s28, 0 }
  0x2f   : > { %1610 = dma.done.wait (%p2027_p4), [#allocation3], 256   ;;  %p2028_p13 = pmov %p2027_p4 }
  0x30   : > { %p2029_p7 = pmov %p2027_p4 }
  0x31   : > { %1612 = vsyncadd (%p2028_p13), [#allocation3], 4294967040 }
  0x32   : > { %1614 = dma.done.wait (%p2029_p7), [#allocation6], 256   ;;  %p2030_p6 = pmov %p2027_p4 }
  0x33   : > { %p300_p9 = scmp.lt.s32.totalorder %s1713_s28, 1  ;;  %vm306_vm0 = vcmask 261120   ;;  %v1501_v7 = vld [vmem:[#allocation2 + $0x8] sm:$0xff]   ;;  %v1641_v8 = vmov 0.0   ;;  %vm1642_vm1 = vmmov 0   ;;  %v1502_v9 = vld [vmem:[#allocation2] sm:$0xff]   ;;  %v405_v28 = vlaneseq }
  0x34   : > { %1616 = vsyncadd (%p2030_p6), [#allocation6], 4294967040  ;;  %1389 = vmatprep.subr.bf16.mxu0 %v1641_v8  ;;  %1393 = vmatprep.mubr.msk.bf16.mxu0 %vm1642_vm1, %v1641_v8  ;;  %v1351_v14 = vld [vmem:[%s2015_s1] ss:$0 sm:$0xff]  ;;  %s1643_s22 = smov 112   ;;  %s1644_s23 = smov 96  }
  0x35   : > { %s301_s14 = scalar_select %p300_p9, %s1713_s28, 1  ;;  %1390 = vmatpush3.bf16.msra.mxu0 %v1501_v7  ;;  %1397 = vmatprep.subr.bf16.mxu1 %v1641_v8  ;;  %v1352_v16 = vld [vmem:[%s2016_s2] ss:$0 sm:$0xff]  ;;  %v1646_v26 = vmov 1983009808   ;;  %v1824_v30 = vshrl.u32 %v405_v28, 7 }
  0x36   : > { %1391 = vmatprep.subr.bf16.mxu0 %v1641_v8  ;;  %1399 = vmatprep.mubr.msk.bf16.mxu1 %vm1642_vm1, %v1641_v8  ;;  %v1812_v24 = vld [vmem:[%s2020_s6] sm:$0xff]  ;;  %s1645_s9 = smov 4   ;;  %v403_v27 = vunpack.c.l.s4 %v1646_v26  ;;  %v1647_v31 = vmov 1934713408   ;;  %s1648_s16 = smov 124   ;;  %vm799_vm2 = vcmask 31744  }
  0x37   : > { %s1350_s15 = sshll.u32 %s301_s14, 3  ;;  %v1819_v25 = vld [vmem:[%s2019_s5] sm:$0xff]  ;;  %v434_v32 = vunpack.c.l.s4 %v1647_v31  ;;  %vm802_vm3 = vcmask 64512   ;;  %vm843_vm4 = vcmask 130048   ;;  %s1649_s13 = smov 64   ;;  %vm970_vm6 = vcmask 1043456  }
  0x38   : > { %s303_s17 = scalar_lea.vmem %s2014_s0, %s1350_s15  ;;  %v404_v29 = vunpack.c.0.s8 %v403_v27  ;;  %s297_s18 = sand.u32 1, %s1627_s25  }
  0x39   : > { %v305_v0 = vld [vmem:[%s303_s17] sm:$0xff]  ;;  %1392 = vmatpush3.bf16.msra.mxu0 %v1502_v9  ;;  %v435_v34 = vunpack.c.0.s8 %v434_v32  ;;  %s1650_s17 = smov 16   ;;  %s1349_s19 = sshll.u32 %s297_s18, 3 }
  0x3a   : > { %v307_v1 = vsel %vm306_vm0, %v305_v0, 0.0  ;;  %1403 = vmatprep.subr.bf16.mxu0 %v1641_v8  ;;  %v1827_v33 = vsub.s32 %v404_v29, %v1824_v30  ;;  %s1372_s20 = sshll.u32 %s1713_s28, 7  ;;  %s299_s21 = scalar_lea.vmem [#allocation7], %s1349_s19 }
  0x3b   : > { %308 = vadd.xlane.f32.xlu0 %v307_v1  ;;  %v1836_v38 = vsub.s32 %v435_v34, %v1824_v30  ;;  %s1972_s8 = scalar_lea.hbm %s2021_s7, %s1372_s20  ;;  %s1651_s28 = smov [#allocation7]  }
  0x3c   : > { %s1571_s15 = sshll.u32 %s1651_s28, 4  ;;  %s1572_s15 = int_to_ptr.vmem [resolvable:$false] %s1571_s15 }
  0xc4   : > { %v309_v2 = vpop.xlane.xlu0 %308 }
  0xc5   : > { %v311_v3 = vmul.f32 0.03125, %v309_v2 }
  0xc7   : > { %v312_v4 = vsub.f32 %v305_v0, %v311_v3 }
  0xc9   : > { %v313_v5 = vmul.f32 %v312_v4, %v312_v4 }
  0xcb   : > { %v314_v6 = vsel %vm306_vm0, %v313_v5, 0.0 }
  0xcc   : > { %315 = vadd.xlane.f32.xlu0 %v314_v6 }
 0x155   : > { %v316_v10 = vpop.xlane.xlu0 %315 }
 0x156   : > { %v317_v11 = vmul.f32 0.03125, %v316_v10 }
 0x158   : > { %v318_v12 = vadd.f32 1e-05, %v317_v11 }
 0x15a   : > { %1505 = vrsqrt.f32 %v318_v12 }
 0x167   : > { %v1506_v13 = vpop.eup %1505 }
 0x168   : > { %v320_v15 = vmul.f32 %v1506_v13, %v312_v4 }
 0x16a   : > { %v328_v17 = vmul.f32 %v1351_v14, %v320_v15 }
 0x16c   : > { %v336_v18 = vadd.f32 %v1352_v16, %v328_v17 }
 0x16e   : > { %v337_v19 = vpack.c.bf16 %v336_v18, %v336_v18 }
 0x170   : > { %1394 = vmatmul.mubr.msk.bf16.vlgmr.msra.gmra.mxu0 %vm306_vm0, %v337_v19 }
 0x171   : > { %1405 = vmatprep.mubr.msk.bf16.mxu0 %vm1642_vm1, %v1641_v8 }
 0x230   : > { %v1805_v20 = vpop.f32.mrf.mxu0 }
 0x231   : > { %398 = vrot.lane.b32.xlu1 %v1805_v20, %s1643_s22  ;;  %v401_v35 = vcombine.high %v1805_v20, %v1641_v8  ;;  %v408_v37 = vrot.slane %v1805_v20, %v1827_v33  ;;  %s1260_s22 = sshll.u32 %s299_s21, 4  ;;  %s1974_s22 = int_to_ptr.vmem [resolvable:$true] %s1260_s22 }
 0x232   : > { %v1395_v21 = vpop.f32.mrf.mxu0  ;;  %s1567_s14 = scalar_lea.vmem %s1974_s22, 128  ;;  %p1574_p11 = scmp.lt.s32.totalorder %s1974_s22, %s1572_s15 }
 0x233   : > { %v415_v41 = vrot.slane %v401_v35, %v1827_v33  ;;  %p1568_p10 = scmp.ne.s32.totalorder %s1974_s22, %s1567_s14 }
 0x234   : > { %v394_v22 = vpop.f32.mrf.mxu0 }
 0x235   : > { %517 = vrot.lane.b32.xlu1 %v1805_v20, %s1644_s23  ;;  %p1569_p12 = pnand %p1568_p10, %p1730_p5 }
 0x236   : > { %v1396_v23 = vpop.f32.mrf.mxu0 }
 0x237   : > { %p1570_p8 = pneg %p1569_p12 }
 0x239   : > { %766 = vrot.lane.b32.xlu1 %v1812_v24, %s1645_s9 }
 0x23d   : > { %782 = vrot.lane.b32.xlu1 %v1819_v25, %s1645_s9 }
 0x2a3   : > { %v1831_v36 = vpop.permute.xlu1 %398 }
 0x2a4   : > { %v416_v39 = vcombine.high %v1831_v36, %v1641_v8  ;;  %v423_v40 = vrot.slane %v1831_v36, %v1827_v33  ;;  %519 = vrot.lane.b32.xlu0 %v1831_v36, %s1644_s23 }
 0x2a6   : > { %v430_v42 = vrot.slane %v416_v39, %v1827_v33  ;;  %v431_v43 = vcombine.low %v408_v37, %v423_v40  ;;  %v432_v44 = vcombine.high %v408_v37, %v423_v40 }
 0x2a7   : > { %v518_v61 = vpop.permute.xlu1 %517 }
 0x2a8   : > { %v439_v45 = vrot.slane %v431_v43, %v1836_v38  ;;  %v446_v46 = vrot.slane %v432_v44, %v1836_v38  ;;  %v447_v47 = vcombine.low %v415_v41, %v430_v42  ;;  %v448_v48 = vcombine.high %v415_v41, %v430_v42 }
 0x2a9   : > { %v523_v5 = vcombine.high %v518_v61, %v1641_v8  ;;  %v530_v7 = vrot.slane %v518_v61, %v1827_v33 }
 0x2aa   : > { %v455_v49 = vrot.slane %v447_v47, %v1836_v38  ;;  %v462_v50 = vrot.slane %v448_v48, %v1836_v38  ;;  %v467_v51 = vcombine.low %v439_v45, %v446_v46  ;;  %v1356_v52 = vcombine.high %v439_v45, %v446_v46 }
 0x2ab   : > { %v767_v2 = vpop.permute.xlu1 %766  ;;  %v537_v11 = vrot.slane %v523_v5, %v1827_v33 }
 0x2ac   : > { %v474_v53 = vrot.slane %v467_v51, %v1827_v33  ;;  %v482_v54 = vrot.slane %v1356_v52, %v1827_v33  ;;  %v483_v55 = vcombine.low %v455_v49, %v462_v50  ;;  %v1357_v56 = vcombine.high %v455_v49, %v462_v50 }
 0x2ae   : > { %v490_v57 = vrot.slane %v483_v55, %v1827_v33  ;;  %v498_v58 = vrot.slane %v1357_v56, %v1827_v33  ;;  %v499_v59 = vcombine.low %v474_v53, %v482_v54 }
 0x2af   : > { %v783_v49 = vpop.permute.xlu1 %782 }
 0x2b0   : > { %v507_v60 = vcombine.low %v490_v57, %v498_v58  ;;  %v506_v62 = vrot.slane %v499_v59, %v1836_v38 }
 0x2b2   : > { %v514_v63 = vrot.slane %v507_v60, %v1836_v38 }
 0x2b4   : > { %v1855_v0 = vcombine.low %v506_v62, %v514_v63  ;;  %v1857_v1 = vcombine.high %v506_v62, %v514_v63 }
 0x2b6   : > { %v769_v3 = vmul.f32 %v767_v2, %v1855_v0  ;;  %v787_v4 = vmul.f32 %v1812_v24, %v1855_v0  ;;  %v770_v47 = vmul.f32 %v767_v2, %v1857_v1  ;;  %v788_v48 = vmul.f32 %v1812_v24, %v1857_v1 }
 0x2b7   : > { %v785_v54 = vmul.f32 %v783_v49, %v1855_v0  ;;  %v763_v55 = vmul.f32 %v1819_v25, %v1855_v0 }
 0x2b8   : > { %773 = vrot.lane.b32.xlu0 %v769_v3, %s1648_s16 }
 0x2bc   : > { %791 = vrot.lane.b32.xlu0 %v787_v4, %s1645_s9 }
 0x316   : > { %v520_v6 = vpop.permute.xlu0 %519 }
 0x317   : > { %v538_v9 = vcombine.high %v520_v6, %v1641_v8  ;;  %v545_v10 = vrot.slane %v520_v6, %v1827_v33 }
 0x319   : > { %v552_v12 = vrot.slane %v538_v9, %v1827_v33  ;;  %v553_v13 = vcombine.low %v530_v7, %v545_v10  ;;  %v554_v14 = vcombine.high %v530_v7, %v545_v10 }
 0x31b   : > { %v561_v15 = vrot.slane %v553_v13, %v1836_v38  ;;  %v568_v16 = vrot.slane %v554_v14, %v1836_v38  ;;  %v569_v17 = vcombine.low %v537_v11, %v552_v12  ;;  %v570_v18 = vcombine.high %v537_v11, %v552_v12 }
 0x31d   : > { %v577_v19 = vrot.slane %v569_v17, %v1836_v38  ;;  %v584_v21 = vrot.slane %v570_v18, %v1836_v38  ;;  %v589_v22 = vcombine.low %v561_v15, %v568_v16  ;;  %v1358_v23 = vcombine.high %v561_v15, %v568_v16 }
 0x31e   : > { %v764_v17 = vmul.f32 %v1819_v25, %v1857_v1 }
 0x31f   : > { %v596_v26 = vrot.slane %v589_v22, %v1827_v33  ;;  %v604_v27 = vrot.slane %v1358_v23, %v1827_v33  ;;  %v605_v29 = vcombine.low %v577_v19, %v584_v21  ;;  %v1359_v31 = vcombine.high %v577_v19, %v584_v21 }
 0x320   : > { %v786_v19 = vmul.f32 %v783_v49, %v1857_v1 }
 0x321   : > { %v612_v32 = vrot.slane %v605_v29, %v1827_v33  ;;  %v620_v34 = vrot.slane %v1359_v31, %v1827_v33  ;;  %v621_v35 = vcombine.low %v596_v26, %v604_v27  ;;  %v939_v31 = vand.u32 127, %v405_v28 }
 0x323   : > { %v629_v37 = vcombine.low %v612_v32, %v620_v34  ;;  %v628_v39 = vrot.slane %v621_v35, %v1836_v38  ;;  %vm940_vm5 = vcmp.le.s32.totalorder %v939_v31, %v1824_v30 }
 0x325   : > { %v636_v40 = vrot.slane %v629_v37, %v1836_v38 }
 0x327   : > { %v637_v41 = vcombine.low %v628_v39, %v636_v40  ;;  %v638_v42 = vcombine.high %v628_v39, %v636_v40 }
 0x329   : > { %v809_v43 = vmul.f32 %v767_v2, %v637_v41  ;;  %v810_v44 = vmul.f32 %v767_v2, %v638_v42  ;;  %v823_v45 = vmul.f32 %v1812_v24, %v637_v41  ;;  %v824_v46 = vmul.f32 %v1812_v24, %v638_v42 }
 0x32a   : > { %v774_v50 = vpop.permute.xlu0 %773  ;;  %v807_v57 = vmul.f32 %v1819_v25, %v637_v41  ;;  %v821_v58 = vmul.f32 %v783_v49, %v637_v41  ;;  %v808_v63 = vmul.f32 %v1819_v25, %v638_v42  ;;  %v822_v2 = vmul.f32 %v783_v49, %v638_v42 }
 0x32b   : > { %813 = vrot.lane.b32.xlu1 %v809_v43, %s1648_s16  ;;  %v779_v60 = vsub.f32 %v763_v55, %v774_v50 }
 0x32e   : > { %v792_v52 = vpop.permute.xlu0 %791 }
 0x32f   : > { %815 = vrot.lane.b32.xlu1 %v810_v44, %s1648_s16  ;;  %v797_v56 = vadd.f32 %v792_v52, %v785_v54 }
 0x331   : > { %v800_v62 = vsel %vm799_vm2, %v779_v60, %v797_v56 }
 0x332   : > { %v803_v10 = vsel %vm802_vm3, %v800_v62, %v1855_v0 }
 0x333   : > { %827 = vrot.lane.b32.xlu1 %v823_v45, %s1645_s9  ;;  %v805_v15 = vmul.f32 0.25, %v803_v10 }
 0x335   : > { %v839_v23 = vpack.c.bf16 %v805_v15, %v805_v15 }
 0x337   : > { %829 = vrot.lane.b32.xlu1 %v824_v46, %s1645_s9 }
 0x33b   : > { %775 = vrot.lane.b32.xlu1 %v770_v47, %s1648_s16  ;;  %s1573_s16 = scalar_lea.vmem %s1572_s15, 256 }
 0x33c   : > { %p1575_p0 = scmp.lt.s32.totalorder %s1573_s16, %s1567_s14 }
 0x33e   : > { %p1576_p1 = por %p1575_p0, %p1574_p11 }
 0x33f   : > { %793 = vrot.lane.b32.xlu1 %v788_v48, %s1645_s9  ;;  %s1247_s9 = scalar_lea.sflag [#allocation4], %s297_s18 }
 0x340   : > { %p1577_p3 = pnand %p1576_p1, %p1570_p8 }
 0x39d   : > { %v814_v51 = vpop.permute.xlu1 %813 }
 0x39e   : > { %v819_v24 = vsub.f32 %v807_v57, %v814_v51 }
 0x3a1   : > { %v816_v53 = vpop.permute.xlu1 %815 }
 0x3a2   : > { %v820_v6 = vsub.f32 %v808_v63, %v816_v53 }
 0x3a5   : > { %v828_v59 = vpop.permute.xlu1 %827 }
 0x3a6   : > { %v833_v61 = vadd.f32 %v828_v59, %v821_v58 }
 0x3a8   : > { %v835_v3 = vsel %vm799_vm2, %v819_v24, %v833_v61 }
 0x3a9   : > { %v830_v4 = vpop.permute.xlu1 %829  ;;  %v837_v5 = vsel %vm802_vm3, %v835_v3, %v637_v41 }
 0x3aa   : > { %v834_v7 = vadd.f32 %v830_v4, %v822_v2  ;;  %v841_v9 = vpack.c.bf16 %v837_v5, %v837_v5 }
 0x3ac   : > { %v836_v11 = vsel %vm799_vm2, %v820_v6, %v834_v7  ;;  %v848_v12 = vsel %vm843_vm4, %v841_v9, 0 }
 0x3ad   : > { %1398 = vmatpush3.bf16.xpose.msra.mxu1 %v848_v12  ;;  %v776_v13 = vpop.permute.xlu1 %775  ;;  %v838_v14 = vsel %vm802_vm3, %v836_v11, %v638_v42 }
 0x3ae   : > { %v842_v16 = vpack.c.bf16 %v838_v14, %v838_v14  ;;  %1409 = vmatprep.subr.bf16.mxu1 %v1641_v8  ;;  %v780_v21 = vsub.f32 %v764_v17, %v776_v13 }
 0x3b0   : > { %v894_v18 = vsel %vm843_vm4, %v842_v16, 0 }
 0x3b1   : > { %1404 = vmatpush3.bf16.xpose.msra.mxu0 %v894_v18  ;;  %v794_v0 = vpop.permute.xlu1 %793 }
 0x3b2   : > { %v798_v22 = vadd.f32 %v794_v0, %v786_v19  ;;  %1415 = vmatprep.subr.bf16.mxu0 %v1641_v8 }
 0x3b4   : > { %v801_v26 = vsel %vm799_vm2, %v780_v21, %v798_v22  ;;  %1400 = vmatmul.mubr.msk.bf16.vlgmr.msra.gmra.mxu1 %vm843_vm4, %v839_v23 }
 0x3b5   : > { %v804_v27 = vsel %vm802_vm3, %v801_v26, %v1857_v1  ;;  %1411 = vmatprep.mubr.msk.bf16.mxu1 %vm1642_vm1, %v1641_v8 }
 0x3b6   : > { %v806_v25 = vmul.f32 0.25, %v804_v27 }
 0x3b8   : > { %v840_v29 = vpack.c.bf16 %v806_v25, %v806_v25  ;;  %v1503_v25 = vld [vmem:[#allocation5 + $0x8] sm:$0xff]  }
 0x3ba   : > { %1406 = vmatmul.mubr.msk.bf16.vlgmr.msra.gmra.mxu0 %vm843_vm4, %v840_v29 }
 0x3bb   : > { %1417 = vmatprep.mubr.msk.bf16.mxu0 %vm1642_vm1, %v1641_v8 }
 0x474   : > { %v884_v32 = vpop.f32.mrf.mxu1 }
 0x475   : > { %v943_v34 = vsel %vm940_vm5, %v884_v32, -1e+30 }
 0x476   : > { %v1401_v35 = vpop.f32.mrf.mxu1  ;;  %v945_v37 = vsel %vm802_vm3, %v943_v34, -inf }
 0x477   : > { %946 = vmax.xlane.f32.xlu0 %v945_v37 }
 0x478   : > { %v887_v1 = vpop.f32.mrf.mxu1 }
 0x47a   : > { %v1402_v39 = vpop.f32.mrf.mxu1  ;;  %v930_v40 = vpop.f32.mrf.mxu0 }
 0x47b   : > { %v944_v41 = vsel %vm940_vm5, %v930_v40, -1e+30 }
 0x47c   : > { %v1407_v42 = vpop.f32.mrf.mxu0  ;;  %v948_v43 = vsel %vm802_vm3, %v944_v41, -inf }
 0x47d   : > { %949 = vmax.xlane.f32.xlu1 %v948_v43 }
 0x47e   : > { %v933_v44 = vpop.f32.mrf.mxu0 }
 0x480   : > { %v1408_v45 = vpop.f32.mrf.mxu0 }
 0x48d   : > { %639 = vrot.lane.b32.xlu0 %v1805_v20, %s1649_s13 }
 0x48e   : > { %641 = vrot.lane.b32.xlu1 %v1831_v36, %s1649_s13 }
 0x500   : > { %v947_v28 = vpop.xlane.xlu0 %946 }
 0x501   : > { %v951_v30 = vsub.f32 %v943_v34, %v947_v28 }
 0x503   : > { %v953_v46 = vmul.f32 1.442695, %v951_v30 }
 0x504   : > { %v640_v47 = vpop.permute.xlu0 %639 }
 0x505   : > { %1507 = vpow2.f32 %v953_v46  ;;  %v645_v50 = vcombine.high %v640_v47, %v1641_v8  ;;  %v652_v53 = vrot.slane %v640_v47, %v1827_v33 }
 0x506   : > { %v950_v48 = vpop.xlane.xlu1 %949 }
 0x507   : > { %v952_v49 = vsub.f32 %v944_v41, %v950_v48  ;;  %v659_v36 = vrot.slane %v645_v50, %v1827_v33 }
 0x509   : > { %v955_v51 = vmul.f32 1.442695, %v952_v49 }
 0x50a   : > { %v642_v52 = vpop.permute.xlu1 %641 }
 0x50b   : > { %1509 = vpow2.f32 %v955_v51  ;;  %v660_v54 = vcombine.high %v642_v52, %v1641_v8  ;;  %v667_v20 = vrot.slane %v642_v52, %v1827_v33 }
 0x50d   : > { %v674_v55 = vrot.slane %v660_v54, %v1827_v33  ;;  %v675_v56 = vcombine.low %v652_v53, %v667_v20  ;;  %v676_v57 = vcombine.high %v652_v53, %v667_v20 }
 0x50f   : > { %v683_v58 = vrot.slane %v675_v56, %v1836_v38  ;;  %v690_v59 = vrot.slane %v676_v57, %v1836_v38  ;;  %v691_v60 = vcombine.low %v659_v36, %v674_v55  ;;  %v692_v24 = vcombine.high %v659_v36, %v674_v55  ;;  %v1504_v36 = vld [vmem:[#allocation5] sm:$0xff]  }
 0x511   : > { %v699_v61 = vrot.slane %v691_v60, %v1836_v38  ;;  %v706_v62 = vrot.slane %v692_v24, %v1836_v38  ;;  %v711_v63 = vcombine.low %v683_v58, %v690_v59  ;;  %v1360_v2 = vcombine.high %v683_v58, %v690_v59 }
 0x512   : > { %v1508_v3 = vpop.eup %1507 }
 0x513   : > { %v718_v4 = vrot.slane %v711_v63, %v1827_v33  ;;  %v726_v5 = vrot.slane %v1360_v2, %v1827_v33  ;;  %v727_v6 = vcombine.low %v699_v61, %v706_v62  ;;  %v1361_v7 = vcombine.high %v699_v61, %v706_v62 }
 0x514   : > { %v957_v9 = vsel %vm802_vm3, %v1508_v3, 0.0  ;;  %v963_v26 = vpack.c.bf16 %v1508_v3, %v1508_v3 }
 0x515   : > { %v734_v10 = vrot.slane %v727_v6, %v1827_v33  ;;  %v742_v11 = vrot.slane %v1361_v7, %v1827_v33  ;;  %958 = vadd.xlane.f32.xlu0 %v957_v9  ;;  %v743_v12 = vcombine.low %v718_v4, %v726_v5 }
 0x517   : > { %v751_v13 = vcombine.low %v734_v10, %v742_v11  ;;  %v750_v16 = vrot.slane %v743_v12, %v1836_v38 }
 0x518   : > { %v1510_v14 = vpop.eup %1509 }
 0x519   : > { %v960_v15 = vsel %vm802_vm3, %v1510_v14, 0.0  ;;  %v758_v17 = vrot.slane %v751_v13, %v1836_v38  ;;  %v964_v27 = vpack.c.bf16 %v1510_v14, %v1510_v14 }
 0x51a   : > { %961 = vadd.xlane.f32.xlu1 %v960_v15 }
 0x51b   : > { %v759_v18 = vcombine.low %v750_v16, %v758_v17  ;;  %v760_v19 = vcombine.high %v750_v16, %v758_v17 }
 0x51d   : > { %v965_v0 = vpack.c.bf16 %v759_v18, %v759_v18  ;;  %v966_v21 = vpack.c.bf16 %v760_v19, %v760_v19 }
 0x51f   : > { %v972_v22 = vsel %vm970_vm6, %v965_v0, 0  ;;  %v1018_v23 = vsel %vm970_vm6, %v966_v21, 0 }
 0x520   : > { %1410 = vmatpush3.bf16.msra.mxu1 %v972_v22  ;;  %1416 = vmatpush3.bf16.msra.mxu0 %v1018_v23 }
 0x521   : > { %1421 = vmatprep.subr.bf16.mxu1 %v1641_v8 }
 0x523   : > { %1412 = vmatmul.mubr.msk.bf16.vlgmr.msra.gmra.mxu1 %vm802_vm3, %v963_v26  ;;  %1418 = vmatmul.mubr.msk.bf16.vlgmr.msra.gmra.mxu0 %vm802_vm3, %v964_v27 }
 0x524   : > { %1425 = vmatprep.mubr.msk.bf16.mxu1 %vm1642_vm1, %v1641_v8  ;;  %1422 = vmatpush3.bf16.msra.mxu1 %v1503_v25 }
 0x525   : > { %1423 = vmatprep.subr.bf16.mxu1 %v1641_v8 }
 0x528   : > { %1424 = vmatpush3.bf16.msra.mxu1 %v1504_v36 }
 0x59e   : > { %v959_v29 = vpop.xlane.xlu0 %958 }
 0x59f   : > { %1511 = vrcp.f32 %v959_v29 }
 0x5a3   : > { %v962_v31 = vpop.xlane.xlu1 %961 }
 0x5a4   : > { %1513 = vrcp.f32 %v962_v31 }
 0x5ac   : > { %v1512_v32 = vpop.eup %1511 }
 0x5b1   : > { %v1514_v34 = vpop.eup %1513 }
 0x5e3   : > { %v1008_v35 = vpop.f32.mrf.mxu1  ;;  %v1054_v37 = vpop.f32.mrf.mxu0 }
 0x5e4   : > { %v1062_v1 = vmul.f32 %v1512_v32, %v1008_v35  ;;  %v1063_v39 = vmul.f32 %v1514_v34, %v1054_v37 }
 0x5e5   : > { %v1413_v40 = vpop.f32.mrf.mxu1  ;;  %v1419_v41 = vpop.f32.mrf.mxu0 }
 0x5e6   : > { %v1064_v42 = vcombine.high %v1062_v1, %v1641_v8  ;;  %v1071_v43 = vrot.slane %v1062_v1, %v1827_v33  ;;  %v1079_v44 = vcombine.high %v1063_v39, %v1641_v8  ;;  %v1086_v45 = vrot.slane %v1063_v39, %v1827_v33 }
 0x5e7   : > { %v1011_v28 = vpop.f32.mrf.mxu1  ;;  %v1057_v30 = vpop.f32.mrf.mxu0 }
 0x5e8   : > { %v1078_v46 = vrot.slane %v1064_v42, %v1827_v33  ;;  %v1093_v47 = vrot.slane %v1079_v44, %v1827_v33  ;;  %v1094_v48 = vcombine.low %v1071_v43, %v1086_v45  ;;  %v1095_v49 = vcombine.high %v1071_v43, %v1086_v45 }
 0x5e9   : > { %v1414_v50 = vpop.f32.mrf.mxu1  ;;  %v1420_v51 = vpop.f32.mrf.mxu0 }
 0x5ea   : > { %v1102_v52 = vrot.slane %v1094_v48, %v1836_v38  ;;  %v1109_v53 = vrot.slane %v1095_v49, %v1836_v38  ;;  %v1110_v54 = vcombine.low %v1078_v46, %v1093_v47  ;;  %v1111_v20 = vcombine.high %v1078_v46, %v1093_v47 }
 0x5ec   : > { %v1118_v8 = vrot.slane %v1110_v54, %v1836_v38  ;;  %v1125_v55 = vrot.slane %v1111_v20, %v1836_v38  ;;  %v1130_v56 = vcombine.low %v1102_v52, %v1109_v53  ;;  %v1366_v57 = vcombine.high %v1102_v52, %v1109_v53 }
 0x5ee   : > { %v1146_v58 = vcombine.low %v1118_v8, %v1125_v55  ;;  %v1367_v59 = vcombine.high %v1118_v8, %v1125_v55  ;;  %v1137_v60 = vrot.slane %v1130_v56, %v1827_v33  ;;  %v1145_v24 = vrot.slane %v1366_v57, %v1827_v33 }
 0x5f0   : > { %v1153_v61 = vrot.slane %v1146_v58, %v1827_v33  ;;  %v1161_v62 = vrot.slane %v1367_v59, %v1827_v33  ;;  %v1162_v63 = vcombine.low %v1137_v60, %v1145_v24 }
 0x5f2   : > { %v1170_v2 = vcombine.low %v1153_v61, %v1161_v62  ;;  %v1169_v3 = vrot.slane %v1162_v63, %v1836_v38 }
 0x5f4   : > { %v1177_v4 = vrot.slane %v1170_v2, %v1836_v38 }
 0x5f6   : > { %v1179_v5 = vcombine.high %v1169_v3, %v1177_v4  ;;  %v1178_v6 = vcombine.low %v1169_v3, %v1177_v4 }
 0x5f8   : > { %1181 = vrot.lane.b32.xlu0 %v1179_v5, %s1650_s17 }
 0x66a   : > { %v1182_v7 = vpop.permute.xlu0 %1181 }
 0x66b   : > { %v1184_v9 = vsel %vm843_vm4, %v1178_v6, %v1182_v7 }
 0x66c   : > { %v1185_v10 = vpack.c.bf16 %v1184_v9, %v1184_v9 }
 0x66e   : > { %1426 = vmatmul.mubr.msk.bf16.vlgmr.msra.gmra.mxu1 %vm306_vm0, %v1185_v10 }
 0x72e   : > { %v1239_v33 = vpop.f32.mrf.mxu1 }
 0x72f   : > { %1245 = vst.msk [vmem:[%s299_s21] sm:$0xff] %vm306_vm0, %v1239_v33 }
 0x730   : > { %v1427_v38 = vpop.f32.mrf.mxu1 }
 0x731   : > { %1580 = shalt.err (!%p1577_p3)
}
 0x732   : > { %s1581_s13 = scalar_lea.hbm %s1972_s8, 128  ;;  %s1585_s19 = scalar_lea.hbm %s2021_s7, 256 }
 0x733   : > { %p1582_p2 = scmp.ne.s32.totalorder %s1972_s8, %s1581_s13  ;;  %p1586_p7 = scmp.lt.s32.totalorder %s1972_s8, %s2021_s7 }
 0x734   : > { %p1587_p6 = scmp.lt.s32.totalorder %s1585_s19, %s1581_s13 }
 0x735   : > { %p1583_p4 = pnand %p1582_p2, %p1730_p5 }
 0x736   : > { %p1588_p9 = por %p1587_p6, %p1586_p7 }
 0x737   : > { %p1584_p13 = pneg %p1583_p4 }
 0x739   : > { %p1589_p10 = pnand %p1588_p9, %p1584_p13 }
 0x73b   : > { %1592 = shalt.err (!%p1589_p10)
}
 0x73c   : > { %1437 = dma.vmem_to_hbm [thread:$0]  (%p1730_p5), %s1974_s22, 128, %s1972_s8, %s1247_s9   ;;  %v1242_v11 = vpop.f32.mrf.mxu1 }
 0x73e   : > { %v1428_v12 = vpop.f32.mrf.mxu1 }
 0x73f PF: > { %p1454_p12 = scmp.ge.s32.totalorder %s1635_s27, 2  ;;  %s1272_s23 = sand.u32 1, %s1623_s24  }
 0x740   : > { %p2031_p8 = scmp.ne.s32.totalorder %s2024_s12, 0  ;;  %s1273_s29 = scalar_lea.sflag [#allocation4], %s1272_s23 }
 0x742   : > { %p1447_p11 = pnand %p1454_p12, %p2031_p8 }
 0x744   : > { %p1448_p0 = pneg %p1447_p11 }
 0x746   : > { %1618 = dma.done.wait (%p1448_p0), %s1273_s29, 128  }
 0x747   : > { %1620 = vsyncadd (%p1448_p0), %s1273_s29, 4294967168  ;;  %p19_p5 = scmp.ge.s32.totalorder %s1717_s30, 4   ;;  %s2032_s24 = smov %s1627_s25 }
 0x748   : > { %s2033_s25 = smov %s1631_s26  ;;  %s2034_s26 = smov %s1728_s10 }
 0x749   : > { %s2035_s27 = smov %s1717_s30  ;;  %21 = sbr.rel (!%p19_p5) target bundleno = 5 (0x5), region = 92 }
 0x74e   :  { %1278 = vsyncpa [#allocation3], 1 }
 0x74f   :  { %1280 = vsyncpa [#allocation3 + $0x1], 1 }
 0x750   :  { %1281 = vsyncpa [#allocation6], 1 }
 0x751   :  { %1282 = vsyncpa [#allocation4], 1 }
 0x752   :  { %1284 = vsyncpa [#allocation4 + $0x1], 1 }

</bundles_post_ra>
